<compile_context>
chip_gen: v7x
topology: tpu7x:2x2x1
jax: 0.10.0
libtpu: 0.0.40
codegen_flags: <defaults>
</compile_context>

<pallas_src>
import jax
import jax.numpy as jnp
from jax.experimental import pallas as pl
from jax.experimental.pallas import tpu as pltpu

LANE = 128


# ----------------------------------------------------------------------------
# Fused MLP kernel: 4 matmuls (bf16 in / f32 acc) + f32 bias + ReLU epilogues.
# BN affines are already folded into W2/b2, W3/b3, W4/b4 by the wrapper.
# ----------------------------------------------------------------------------
def bird_dnn_kernel(x_ref,
                    w1_ref, b1_ref,
                    w2_ref, b2_ref,
                    w3_ref, b3_ref,
                    w4_ref, b4_ref,
                    o_ref):
    # Layer 1: Linear -> ReLU   (its BN is folded into W2/b2)
    h = jnp.dot(x_ref[...], w1_ref[...],
                preferred_element_type=jnp.float32) + b1_ref[...]
    h = jnp.maximum(h, 0.0)

    # Layer 2: Linear -> ReLU   (its BN is folded into W3/b3)
    h = jnp.dot(h.astype(jnp.bfloat16), w2_ref[...],
                preferred_element_type=jnp.float32) + b2_ref[...]
    h = jnp.maximum(h, 0.0)

    # Layer 3: Linear -> ReLU   (its BN is folded into W4/b4)
    h = jnp.dot(h.astype(jnp.bfloat16), w3_ref[...],
                preferred_element_type=jnp.float32) + b3_ref[...]
    h = jnp.maximum(h, 0.0)

    # Output layer (lane-padded to a multiple of 128 classes, no activation)
    o_ref[...] = (jnp.dot(h.astype(jnp.bfloat16), w4_ref[...],
                          preferred_element_type=jnp.float32)
                  + b4_ref[...]).astype(o_ref.dtype)

    # TODO(synk): training-mode Dropout / batch-statistic BatchNorm not
    # implemented (forward matches model.eval() semantics).


# ----------------------------------------------------------------------------
# Offline parameter preparation: fold BN into next layer (f32), pad output
# layer to 128 lanes, cast weights to bf16 (biases stay f32).
# ----------------------------------------------------------------------------
def fold_params(params):
    (w1, b1, s1, t1), (w2, b2, s2, t2), (w3, b3, s3, t3), (w4, b4) = params

    # h_bn = relu(x@W + b) * s + t  ==>  next layer sees
    # h_bn @ Wn + bn = relu(...) @ (diag(s) @ Wn) + (t @ Wn + bn)
    w2f = w2 * s1.reshape(-1, 1)
    b2f = b2 + t1 @ w2
    w3f = w3 * s2.reshape(-1, 1)
    b3f = b3 + t2 @ w3
    w4f = w4 * s3.reshape(-1, 1)
    b4f = b4 + t3 @ w4

    num_classes = w4.shape[1]
    nc_pad = max(LANE, ((num_classes + LANE - 1) // LANE) * LANE)
    w4p = jnp.zeros((w4f.shape[0], nc_pad), jnp.float32).at[:, :num_classes].set(w4f)
    b4p = jnp.zeros((1, nc_pad), jnp.float32).at[:, :num_classes].set(b4f)

    bf = jnp.bfloat16
    weight_ops = (w1.astype(bf), b1.astype(jnp.float32),
                  w2f.astype(bf), b2f.astype(jnp.float32),
                  w3f.astype(bf), b3f.astype(jnp.float32),
                  w4p.astype(bf), b4p.astype(jnp.float32))
    return weight_ops, num_classes, nc_pad


def bird_dnn_forward(x, params, *, batch_tile=256):
    weight_ops, num_classes, nc_pad = fold_params(params)
    B, F = x.shape

    # Batch tile: biggest power-of-two-ish tile; must be a multiple of 8 or
    # equal to B to satisfy the (8,128) block constraint.
    tb = batch_tile if B >= batch_tile else B
    grid = (pl.cdiv(B, tb),)

    x_bf = x.astype(jnp.bfloat16)

    def batch_map(i):
        return (i, 0)

    def const_map(i):
        return (0, 0)

    in_specs = ([pl.BlockSpec((tb, F), batch_map)]
                + [pl.BlockSpec(op.shape, const_map) for op in weight_ops])
    out_spec = pl.BlockSpec((tb, nc_pad), batch_map)

    h1 = weight_ops[0].shape[1]
    h2 = weight_ops[2].shape[1]
    h3 = weight_ops[4].shape[1]
    flops = 2 * B * (F * h1 + h1 * h2 + h2 * h3 + h3 * nc_pad)
    bytes_accessed = (sum(int(op.size) * op.dtype.itemsize for op in weight_ops)
                      + int(x_bf.size) * 2 + B * nc_pad * 4)
    cost = pl.CostEstimate(flops=flops, transcendentals=0,
                           bytes_accessed=int(bytes_accessed))

    out = pl.pallas_call(
        bird_dnn_kernel,
        out_shape=jax.ShapeDtypeStruct((B, nc_pad), jnp.float32),
        grid_spec=pltpu.PrefetchScalarGridSpec(
            num_scalar_prefetch=0,
            grid=grid,
            in_specs=in_specs,
            out_specs=out_spec,
        ),
        compiler_params=pltpu.CompilerParams(
            dimension_semantics=("parallel",),
            vmem_limit_bytes=32 * 1024 * 1024,
        ),
        cost_estimate=cost,
    )(x_bf, *weight_ops)

    # Slice away the lane padding.
    return out[:, :num_classes]


# ----------------------------------------------------------------------------
# Deterministic synthetic parameters (PyTorch-default-like init) + reference.
# ----------------------------------------------------------------------------
def make_params(key, input_dim, num_classes, hidden_layers=(1024, 512, 256),
                eps=1e-5):
    dims = [input_dim] + list(hidden_layers) + [num_classes]
    params = []
    for li in range(len(dims) - 1):
        fan_in, fan_out = dims[li], dims[li + 1]
        key, kw, kb, kg, kbeta, km, kv = jax.random.split(key, 7)
        bound = 1.0 / jnp.sqrt(fan_in)
        # nn.Linear stores weight as (out,in); we store its transpose (in,out).
        W = jax.random.uniform(kw, (fan_in, fan_out), jnp.float32, -bound, bound)
        b = jax.random.uniform(kb, (1, fan_out), jnp.float32, -bound, bound)
        if li < len(hidden_layers):
            gamma = 1.0 + 0.1 * jax.random.normal(kg, (1, fan_out), jnp.float32)
            beta = 0.1 * jax.random.normal(kbeta, (1, fan_out), jnp.float32)
            rmean = 0.1 * jax.random.normal(km, (1, fan_out), jnp.float32)
            rvar = 1.0 + 0.1 * jax.random.uniform(kv, (1, fan_out), jnp.float32)
            scale = gamma / jnp.sqrt(rvar + eps)
            shift = beta - rmean * scale
            params.append((W, b, scale, shift))
        else:
            params.append((W, b))
    return params


def reference_forward(x, params):
    """Pure-JAX f32 reference of the same eval-mode forward pass."""
    (w1, b1, s1, t1), (w2, b2, s2, t2), (w3, b3, s3, t3), (w4, b4) = params
    h = jnp.maximum(x @ w1 + b1, 0.0) * s1 + t1
    h = jnp.maximum(h @ w2 + b2, 0.0) * s2 + t2
    h = jnp.maximum(h @ w3 + b3, 0.0) * s3 + t3
    return h @ w4 + b4


if __name__ == "__main__":
    key = jax.random.PRNGKey(0)
    kx, kp = jax.random.split(key)

    batch = 8
    input_dim = 32        # synthetic feature-vector length
    num_classes = 16      # synthetic number of bird species
    hidden_layers = (1024, 512, 256)

    x = jax.random.normal(kx, (batch, input_dim), jnp.float32)
    params = make_params(kp, input_dim, num_classes, hidden_layers)

    out = bird_dnn_forward(x, params)
    out = jax.block_until_ready(out)

    ref = reference_forward(x, params)
    assert out.shape == (batch, num_classes)
    # bf16 matmul inputs => ~1% relative error vs f32 reference; loosened tol.
    assert jnp.allclose(out, ref, atol=3e-2, rtol=3e-2), "mismatch vs reference"

    print("KERNEL_OK")
</pallas_src>

<mosaic_0001>
module attributes {stable_mosaic.version = 11 : i64} {
  func.func @bird_dnn_kernel(%arg0: i32, %arg1: memref<8x32xbf16, #tpu.memory_space<vmem>>, %arg2: memref<32x1024xbf16, #tpu.memory_space<vmem>>, %arg3: memref<1x1024xf32, #tpu.memory_space<vmem>>, %arg4: memref<1024x512xbf16, #tpu.memory_space<vmem>>, %arg5: memref<1x512xf32, #tpu.memory_space<vmem>>, %arg6: memref<512x256xbf16, #tpu.memory_space<vmem>>, %arg7: memref<1x256xf32, #tpu.memory_space<vmem>>, %arg8: memref<256x128xbf16, #tpu.memory_space<vmem>>, %arg9: memref<1x128xf32, #tpu.memory_space<vmem>>, %arg10: memref<8x128xf32, #tpu.memory_space<vmem>>) attributes {dimension_semantics = [#tpu.dimension_semantics<parallel>], iteration_bounds = array<i64: 1>, scalar_prefetch = 0 : i64, scratch_operands = 0 : i64, tpu.core_type = #tpu.core_type<tc>, window_params = [{transform_indices = @transform_0, window_bounds = array<i64: 8, 32>}, {pipeline_mode = #tpu.pipeline_mode<synchronous>, transform_indices = @transform_1, window_bounds = array<i64: 32, 1024>}, {pipeline_mode = #tpu.pipeline_mode<synchronous>, transform_indices = @transform_2, window_bounds = array<i64: 1, 1024>}, {pipeline_mode = #tpu.pipeline_mode<synchronous>, transform_indices = @transform_3, window_bounds = array<i64: 1024, 512>}, {pipeline_mode = #tpu.pipeline_mode<synchronous>, transform_indices = @transform_4, window_bounds = array<i64: 1, 512>}, {pipeline_mode = #tpu.pipeline_mode<synchronous>, transform_indices = @transform_5, window_bounds = array<i64: 512, 256>}, {pipeline_mode = #tpu.pipeline_mode<synchronous>, transform_indices = @transform_6, window_bounds = array<i64: 1, 256>}, {pipeline_mode = #tpu.pipeline_mode<synchronous>, transform_indices = @transform_7, window_bounds = array<i64: 256, 128>}, {pipeline_mode = #tpu.pipeline_mode<synchronous>, transform_indices = @transform_8, window_bounds = array<i64: 1, 128>}, {transform_indices = @transform_9, window_bounds = array<i64: 8, 128>}]} {
    %c0 = arith.constant 0 : index
    %c0_0 = arith.constant 0 : index
    %0 = vector.load %arg1[%c0, %c0_0] : memref<8x32xbf16, #tpu.memory_space<vmem>>, vector<8x32xbf16>
    %c0_1 = arith.constant 0 : index
    %c0_2 = arith.constant 0 : index
    %1 = vector.load %arg2[%c0_1, %c0_2] : memref<32x1024xbf16, #tpu.memory_space<vmem>>, vector<32x1024xbf16>
    %cst = arith.constant dense<0.000000e+00> : vector<8x1024xf32>
    %2 = tpu.matmul %0, %1, %cst {dimension_numbers = #tpu.dot_dimension_numbers<[1], [0], [0], [1], [0, 0, 1, 1], [], []>} : vector<8x32xbf16>, vector<32x1024xbf16>, vector<8x1024xf32> -> vector<8x1024xf32>
    %c0_3 = arith.constant 0 : index
    %c0_4 = arith.constant 0 : index
    %3 = vector.load %arg3[%c0_3, %c0_4] : memref<1x1024xf32, #tpu.memory_space<vmem>>, vector<1x1024xf32>
    %4 = vector.broadcast %3 : vector<1x1024xf32> to vector<8x1024xf32>
    %5 = arith.addf %2, %4 : vector<8x1024xf32>
    %cst_5 = arith.constant 0.000000e+00 : f32
    %6 = vector.broadcast %cst_5 : f32 to vector<8x1024xf32>
    %7 = arith.maximumf %5, %6 : vector<8x1024xf32>
    %8 = arith.truncf %7 : vector<8x1024xf32> to vector<8x1024xbf16>
    %c0_6 = arith.constant 0 : index
    %c0_7 = arith.constant 0 : index
    %9 = vector.load %arg4[%c0_6, %c0_7] : memref<1024x512xbf16, #tpu.memory_space<vmem>>, vector<1024x512xbf16>
    %cst_8 = arith.constant dense<0.000000e+00> : vector<8x512xf32>
    %10 = tpu.matmul %8, %9, %cst_8 {dimension_numbers = #tpu.dot_dimension_numbers<[1], [0], [0], [1], [0, 0, 1, 1], [], []>} : vector<8x1024xbf16>, vector<1024x512xbf16>, vector<8x512xf32> -> vector<8x512xf32>
    %c0_9 = arith.constant 0 : index
    %c0_10 = arith.constant 0 : index
    %11 = vector.load %arg5[%c0_9, %c0_10] : memref<1x512xf32, #tpu.memory_space<vmem>>, vector<1x512xf32>
    %12 = vector.broadcast %11 : vector<1x512xf32> to vector<8x512xf32>
    %13 = arith.addf %10, %12 : vector<8x512xf32>
    %cst_11 = arith.constant 0.000000e+00 : f32
    %14 = vector.broadcast %cst_11 : f32 to vector<8x512xf32>
    %15 = arith.maximumf %13, %14 : vector<8x512xf32>
    %16 = arith.truncf %15 : vector<8x512xf32> to vector<8x512xbf16>
    %c0_12 = arith.constant 0 : index
    %c0_13 = arith.constant 0 : index
    %17 = vector.load %arg6[%c0_12, %c0_13] : memref<512x256xbf16, #tpu.memory_space<vmem>>, vector<512x256xbf16>
    %cst_14 = arith.constant dense<0.000000e+00> : vector<8x256xf32>
    %18 = tpu.matmul %16, %17, %cst_14 {dimension_numbers = #tpu.dot_dimension_numbers<[1], [0], [0], [1], [0, 0, 1, 1], [], []>} : vector<8x512xbf16>, vector<512x256xbf16>, vector<8x256xf32> -> vector<8x256xf32>
    %c0_15 = arith.constant 0 : index
    %c0_16 = arith.constant 0 : index
    %19 = vector.load %arg7[%c0_15, %c0_16] : memref<1x256xf32, #tpu.memory_space<vmem>>, vector<1x256xf32>
    %20 = vector.broadcast %19 : vector<1x256xf32> to vector<8x256xf32>
    %21 = arith.addf %18, %20 : vector<8x256xf32>
    %cst_17 = arith.constant 0.000000e+00 : f32
    %22 = vector.broadcast %cst_17 : f32 to vector<8x256xf32>
    %23 = arith.maximumf %21, %22 : vector<8x256xf32>
    %24 = arith.truncf %23 : vector<8x256xf32> to vector<8x256xbf16>
    %c0_18 = arith.constant 0 : index
    %c0_19 = arith.constant 0 : index
    %25 = vector.load %arg8[%c0_18, %c0_19] : memref<256x128xbf16, #tpu.memory_space<vmem>>, vector<256x128xbf16>
    %cst_20 = arith.constant dense<0.000000e+00> : vector<8x128xf32>
    %26 = tpu.matmul %24, %25, %cst_20 {dimension_numbers = #tpu.dot_dimension_numbers<[1], [0], [0], [1], [0, 0, 1, 1], [], []>} : vector<8x256xbf16>, vector<256x128xbf16>, vector<8x128xf32> -> vector<8x128xf32>
    %c0_21 = arith.constant 0 : index
    %c0_22 = arith.constant 0 : index
    %27 = vector.load %arg9[%c0_21, %c0_22] : memref<1x128xf32, #tpu.memory_space<vmem>>, vector<1x128xf32>
    %28 = vector.broadcast %27 : vector<1x128xf32> to vector<8x128xf32>
    %29 = arith.addf %26, %28 : vector<8x128xf32>
    %c0_23 = arith.constant 0 : index
    %c0_24 = arith.constant 0 : index
    %30 = vector.load %arg10[%c0_23, %c0_24] : memref<8x128xf32, #tpu.memory_space<vmem>>, vector<8x128xf32>
    tpu.vector_store %arg10[%c0_23, %c0_24], %29 {strides = array<i32>} : memref<8x128xf32, #tpu.memory_space<vmem>>, vector<8x128xf32>,
    return
  }
  func.func @transform_0(%arg0: i32) -> (i32, i32) {
    %c0_i32 = arith.constant 0 : i32
    %c0_i32_0 = arith.constant 0 : i32
    return %arg0, %c0_i32 : i32, i32
  }
  func.func @transform_1(%arg0: i32) -> (i32, i32) {
    %c0_i32 = arith.constant 0 : i32
    %c0_i32_0 = arith.constant 0 : i32
    %c0_i32_1 = arith.constant 0 : i32
    return %c0_i32, %c0_i32_0 : i32, i32
  }
  func.func @transform_2(%arg0: i32) -> (i32, i32) {
    %c0_i32 = arith.constant 0 : i32
    %c0_i32_0 = arith.constant 0 : i32
    %c0_i32_1 = arith.constant 0 : i32
    return %c0_i32, %c0_i32_0 : i32, i32
  }
  func.func @transform_3(%arg0: i32) -> (i32, i32) {
    %c0_i32 = arith.constant 0 : i32
    %c0_i32_0 = arith.constant 0 : i32
    %c0_i32_1 = arith.constant 0 : i32
    return %c0_i32, %c0_i32_0 : i32, i32
  }
  func.func @transform_4(%arg0: i32) -> (i32, i32) {
    %c0_i32 = arith.constant 0 : i32
    %c0_i32_0 = arith.constant 0 : i32
    %c0_i32_1 = arith.constant 0 : i32
    return %c0_i32, %c0_i32_0 : i32, i32
  }
  func.func @transform_5(%arg0: i32) -> (i32, i32) {
    %c0_i32 = arith.constant 0 : i32
    %c0_i32_0 = arith.constant 0 : i32
    %c0_i32_1 = arith.constant 0 : i32
    return %c0_i32, %c0_i32_0 : i32, i32
  }
  func.func @transform_6(%arg0: i32) -> (i32, i32) {
    %c0_i32 = arith.constant 0 : i32
    %c0_i32_0 = arith.constant 0 : i32
    %c0_i32_1 = arith.constant 0 : i32
    return %c0_i32, %c0_i32_0 : i32, i32
  }
  func.func @transform_7(%arg0: i32) -> (i32, i32) {
    %c0_i32 = arith.constant 0 : i32
    %c0_i32_0 = arith.constant 0 : i32
    %c0_i32_1 = arith.constant 0 : i32
    return %c0_i32, %c0_i32_0 : i32, i32
  }
  func.func @transform_8(%arg0: i32) -> (i32, i32) {
    %c0_i32 = arith.constant 0 : i32
    %c0_i32_0 = arith.constant 0 : i32
    %c0_i32_1 = arith.constant 0 : i32
    return %c0_i32, %c0_i32_0 : i32, i32
  }
  func.func @transform_9(%arg0: i32) -> (i32, i32) {
    %c0_i32 = arith.constant 0 : i32
    %c0_i32_0 = arith.constant 0 : i32
    return %arg0, %c0_i32 : i32, i32
  }
}

</mosaic_0001>

<bundles_post_ra>
// kernel: tpu_custom_call.1
= control target key start
LH: loop header
LB: loop body
LE: loop exit
PB: predicated region body
PF: predicated region fallthrough
CT: control target
= control target key end

     0   :  { %14 = vsyncpa [#allocation3], 0  ;;  %s4346_s0 = inlined_call_operand.hbm [shape: bf16[8,32], index: 0, kind: input, shape index: {}]   ;;  %s4347_s1 = inlined_call_operand.hbm [shape: bf16[32,1024], index: 1, kind: input, shape index: {}]   ;;  %s4348_s2 = inlined_call_operand.hbm [shape: f32[1,1024], index: 2, kind: input, shape index: {}]   ;;  %s4349_s3 = inlined_call_operand.hbm [shape: bf16[1024,512], index: 3, kind: input, shape index: {}]   ;;  %s4350_s4 = inlined_call_operand.vmem [shape: f32[1,512], index: 4, kind: input, shape index: {}]   ;;  %s4351_s5 = inlined_call_operand.hbm [shape: bf16[512,256], index: 5, kind: input, shape index: {}]   ;;  %s4352_s6 = inlined_call_operand.vmem [shape: f32[1,256], index: 6, kind: input, shape index: {}]   ;;  %s4353_s7 = inlined_call_operand.hbm [shape: bf16[256,128], index: 7, kind: input, shape index: {}]   ;;  %s4354_s8 = inlined_call_operand.vmem [shape: f32[1,128], index: 8, kind: input, shape index: {}]   ;;  %s4355_s9 = inlined_call_operand.hbm [shape: f32[8,128], index: 9, kind: output, shape index: {}]  }
   0x1   :  { %15 = vsyncpa [#allocation6], 0 }
   0x2   :  { %16 = vsyncpa [#allocation9], 0 }
   0x3   :  { %17 = vsyncpa [#allocation12], 0 }
   0x4   :  { %18 = vsyncpa [#allocation4], 0  ;;  %s4092_s30 = smov [#allocation5]   ;;  %s3928_s13 = scalar_lea.hbm %s4347_s1, 2048 }
   0x5   :  { %s34_s10 = sshll.u32 %s4092_s30, 4  ;;  %p3929_p0 = scmp.ne.s32.totalorder %s4347_s1, %s3928_s13  ;;  %s35_s10 = int_to_ptr.vmem [resolvable:$true] %s34_s10 }
   0x6   :  { %p3932_p1 = scmp.lt.u32.totalorder %s3928_s13, %s4347_s1 }
   0x8   :  { %p3934_p2 = pnand %p3932_p1, %p3929_p0 }
   0xa   :  { %3937 = shalt.err (!%p3934_p2)
}
   0xb   :  { %s3938_s18 = scalar_lea.vmem %s35_s10, 2048  ;;  %p3943_p4 = scmp.lt.s32.totalorder %s35_s10, %s35_s10 }
   0xc   :  { %p3939_p3 = scmp.ne.s32.totalorder %s35_s10, %s3938_s18  ;;  %p3944_p5 = scmp.lt.s32.totalorder %s3938_s18, %s3938_s18 }
   0xe   :  { %p3945_p6 = por %p3944_p5, %p3943_p4 }
  0x10   :  { %p3946_p7 = pnand %p3945_p6, %p3939_p3 }
  0x12   :  { %3949 = shalt.err (!%p3946_p7)
}
  0x13   :  { %s4093_s19 = smov 512   ;;  %s4094_s20 = smov 32  }
  0x14   :  { %40 = dma.hbm_to_vmem [thread:$0]  %s4347_s1, 2048, %s35_s10, [#allocation6], %s4093_s19, %s4093_s19, %s4094_s20  }
  0x15   :  { %s4095_s23 = smov [#allocation8]   ;;  %s3950_s27 = scalar_lea.hbm %s4349_s3, 32768 }
  0x16   :  { %s56_s24 = sshll.u32 %s4095_s23, 4  ;;  %p3951_p8 = scmp.ne.s32.totalorder %s4349_s3, %s3950_s27  ;;  %s57_s24 = int_to_ptr.vmem [resolvable:$true] %s56_s24 }
  0x17   :  { %p3954_p9 = scmp.lt.u32.totalorder %s3950_s27, %s4349_s3 }
  0x19   :  { %p3956_p10 = pnand %p3954_p9, %p3951_p8 }
  0x1b   :  { %3959 = shalt.err (!%p3956_p10)
}
  0x1c   :  { %s3960_s12 = scalar_lea.vmem %s57_s24, 32768  ;;  %p3965_p12 = scmp.lt.s32.totalorder %s57_s24, %s57_s24 }
  0x1d   :  { %p3961_p11 = scmp.ne.s32.totalorder %s57_s24, %s3960_s12  ;;  %p3966_p13 = scmp.lt.s32.totalorder %s3960_s12, %s3960_s12 }
  0x1f   :  { %p3967_p0 = por %p3966_p13, %p3965_p12 }
  0x21   :  { %p3968_p1 = pnand %p3967_p0, %p3961_p11 }
  0x23   :  { %3971 = shalt.err (!%p3968_p1)
}
  0x24   :  { %s4096_s1 = smov 256   ;;  %s4097_s10 = smov 16  }
  0x25   :  { %62 = dma.hbm_to_vmem [thread:$0]  %s4349_s3, 32768, %s57_s24, [#allocation9], %s4096_s1, %s4096_s1, %s4097_s10  }
  0x26   :  { %s4098_s15 = smov [#allocation2]   ;;  %s4099_s17 = smov [#allocation7]  }
  0x27   :  { %s25_s16 = sshll.u32 %s4098_s15, 4  ;;  %s47_s18 = sshll.u32 %s4099_s17, 4  ;;  %s26_s16 = int_to_ptr.vmem [resolvable:$true] %s25_s16  ;;  %s48_s18 = int_to_ptr.vmem [resolvable:$true] %s47_s18 }
  0x28   :  { %s3972_s21 = scalar_lea.hbm %s4346_s0, 64 }
  0x29   :  { %p3973_p2 = scmp.ne.s32.totalorder %s4346_s0, %s3972_s21  ;;  %p3976_p3 = scmp.lt.u32.totalorder %s3972_s21, %s4346_s0 }
  0x2b   :  { %p3978_p4 = pnand %p3976_p3, %p3973_p2 }
  0x2d   :  { %3981 = shalt.err (!%p3978_p4)
}
  0x2e   :  { %s3982_s3 = scalar_lea.vmem %s26_s16, 64  ;;  %p3987_p6 = scmp.lt.s32.totalorder %s26_s16, %s26_s16 }
  0x2f   :  { %p3983_p5 = scmp.ne.s32.totalorder %s26_s16, %s3982_s3  ;;  %p3988_p7 = scmp.lt.s32.totalorder %s3982_s3, %s3982_s3 }
  0x31   :  { %p3989_p8 = por %p3988_p7, %p3987_p6 }
  0x33   :  { %p3990_p9 = pnand %p3989_p8, %p3983_p5 }
  0x35   :  { %3993 = shalt.err (!%p3990_p9)
}
  0x36   :  { %28 = dma.hbm_to_vmem [thread:$0]  %s4346_s0, 64, %s26_s16, [#allocation3]  }
  0x37   :  { %s3994_s30 = scalar_lea.hbm %s4348_s2, 128 }
  0x38   :  { %p3995_p10 = scmp.ne.s32.totalorder %s4348_s2, %s3994_s30  ;;  %p3998_p11 = scmp.lt.u32.totalorder %s3994_s30, %s4348_s2 }
  0x3a   :  { %p4000_p12 = pnand %p3998_p11, %p3995_p10 }
  0x3c   :  { %4003 = shalt.err (!%p4000_p12)
}
  0x3d   :  { %s4004_s13 = scalar_lea.vmem %s48_s18, 128  ;;  %p4009_p0 = scmp.lt.s32.totalorder %s48_s18, %s48_s18 }
  0x3e   :  { %p4005_p13 = scmp.ne.s32.totalorder %s48_s18, %s4004_s13  ;;  %p4010_p1 = scmp.lt.s32.totalorder %s4004_s13, %s4004_s13 }
  0x40   :  { %p4011_p2 = por %p4010_p1, %p4009_p0 }
  0x42   :  { %p4012_p3 = pnand %p4011_p2, %p4005_p13 }
  0x44   :  { %4015 = shalt.err (!%p4012_p3)
}
  0x45   :  { %50 = dma.hbm_to_vmem [thread:$0]  %s4348_s2, 128, %s48_s18, [#allocation6]  }
  0x46   :  { %s4100_s15 = smov [#allocation10]   ;;  %s4016_s20 = scalar_lea.hbm %s4351_s5, 8192 }
  0x47   :  { %s70_s16 = sshll.u32 %s4100_s15, 4  ;;  %p4017_p4 = scmp.ne.s32.totalorder %s4351_s5, %s4016_s20  ;;  %s71_s16 = int_to_ptr.vmem [resolvable:$true] %s70_s16 }
  0x48   :  { %p4020_p5 = scmp.lt.u32.totalorder %s4016_s20, %s4351_s5 }
  0x4a   :  { %p4022_p6 = pnand %p4020_p5, %p4017_p4 }
  0x4c   :  { %4025 = shalt.err (!%p4022_p6)
}
  0x4d   :  { %s4026_s26 = scalar_lea.vmem %s71_s16, 8192  ;;  %p4031_p8 = scmp.lt.s32.totalorder %s71_s16, %s71_s16 }
  0x4e   :  { %p4027_p7 = scmp.ne.s32.totalorder %s71_s16, %s4026_s26  ;;  %p4032_p9 = scmp.lt.s32.totalorder %s4026_s26, %s4026_s26 }
  0x50   :  { %p4033_p10 = por %p4032_p9, %p4031_p8 }
  0x52   :  { %p4034_p11 = pnand %p4033_p10, %p4027_p7 }
  0x54   :  { %4037 = shalt.err (!%p4034_p11)
}
  0x55   :  { %s4101_s2 = smov 128   ;;  %s4102_s18 = smov 8  }
  0x56   :  { %76 = dma.hbm_to_vmem [thread:$0]  %s4351_s5, 8192, %s71_s16, [#allocation9], %s4101_s2, %s4101_s2, %s4102_s18  }
  0x57   :  { %s4103_s27 = smov [#allocation11]   ;;  %s4038_s11 = scalar_lea.hbm %s4353_s7, 2048 }
  0x58   :  { %s84_s28 = sshll.u32 %s4103_s27, 4  ;;  %p4039_p12 = scmp.ne.s32.totalorder %s4353_s7, %s4038_s11  ;;  %s85_s28 = int_to_ptr.vmem [resolvable:$true] %s84_s28 }
  0x59   :  { %p4042_p13 = scmp.lt.u32.totalorder %s4038_s11, %s4353_s7 }
  0x5b   :  { %p4044_p0 = pnand %p4042_p13, %p4039_p12 }
  0x5d   :  { %4047 = shalt.err (!%p4044_p0)
}
  0x5e   :  { %s4048_s0 = scalar_lea.vmem %s85_s28, 2048  ;;  %p4053_p2 = scmp.lt.s32.totalorder %s85_s28, %s85_s28 }
  0x5f   :  { %p4049_p1 = scmp.ne.s32.totalorder %s85_s28, %s4048_s0  ;;  %p4054_p3 = scmp.lt.s32.totalorder %s4048_s0, %s4048_s0 }
  0x61   :  { %p4055_p4 = por %p4054_p3, %p4053_p2 }
  0x63   :  { %p4056_p5 = pnand %p4055_p4, %p4049_p1 }
  0x65   :  { %4059 = shalt.err (!%p4056_p5)
}
  0x66   :  { %s4104_s5 = smov 64   ;;  %s4105_s14 = smov 4  }
  0x67   :  { %90 = dma.hbm_to_vmem [thread:$0]  %s4353_s7, 2048, %s85_s28, [#allocation12], %s4104_s5, %s4104_s5, %s4105_s14  }
  0x68   :  { %4082 = dma.done.wait [#allocation3], 64  }
  0x69   :  { %4083 = vsyncadd [#allocation3], 4294967232 }
  0x6a   :  { %4084 = dma.done.wait [#allocation6], 2176  }
  0x6b   :  { %4085 = vsyncadd [#allocation6], 4294965120 }
  0x6c   :  { %4086 = dma.done.wait [#allocation9], 40960  }
  0x6d   :  { %4087 = vsyncadd [#allocation9], 4294926336 }
  0x6e   :  { %4088 = dma.done.wait [#allocation12], 2048  }
  0x6f   :  { %4089 = vsyncadd [#allocation12], 4294965248  ;;  %v4106_v0 = vmov 0   ;;  %v113_v1 = vld [vmem:[#allocation5] sm:$0xff]  ;;  %v114_v8 = vld [vmem:[#allocation5 + $0x8] sm:$0xff]  ;;  %vm251_vm0 = vcmask 261120  }
  0x70   :  { %287 = vmatprep.mubr.bf16.mxu0 %v4106_v0  ;;  %v117_v2 = vld [vmem:[#allocation5 + $0x20] sm:$0xff]  ;;  %v118_v9 = vld [vmem:[#allocation5 + $0x28] sm:$0xff]  ;;  %v4231_v17 = vld [vmem:[#allocation2] sm:$0xf] }
  0x71   :  { %v121_v3 = vld [vmem:[#allocation5 + $0x40] sm:$0xff]  ;;  %v3006_v4 = vcombine.high %v113_v1, %v117_v2  ;;  %v3005_v5 = vcombine.low %v113_v1, %v117_v2  ;;  %v3008_v11 = vcombine.high %v114_v8, %v118_v9  ;;  %v122_v12 = vld [vmem:[#allocation5 + $0x48] sm:$0xff]  ;;  %v3007_v18 = vcombine.low %v114_v8, %v118_v9  ;;  %v115_v21 = vld [vmem:[#allocation5 + $0x10] sm:$0xff] }
  0x72   :  { %v125_v6 = vld [vmem:[#allocation5 + $0x60] sm:$0xff]  ;;  %v126_v13 = vld [vmem:[#allocation5 + $0x68] sm:$0xff]  ;;  %v119_v22 = vld [vmem:[#allocation5 + $0x30] sm:$0xff] }
  0x73   :  { %v3014_v7 = vcombine.high %v121_v3, %v125_v6  ;;  %255 = vmatprep.subr.bf16.mxu0 %v3006_v4  ;;  %v3013_v10 = vcombine.low %v121_v3, %v125_v6  ;;  %v3432_v14 = vld [vmem:[#allocation8 + $0x4] ss:$16 sps:$4 sm:$0xff]   ;;  %v3434_v15 = vld [vmem:[#allocation8] ss:$16 sps:$4 sm:$0xff]   ;;  %v3016_v19 = vcombine.high %v122_v12, %v126_v13  ;;  %v3015_v24 = vcombine.low %v122_v12, %v126_v13  ;;  %v123_v25 = vld [vmem:[#allocation5 + $0x50] sm:$0xff] }
  0x74   :  { %256 = vmatpush1.bf16.msra.mxu0 %v3005_v5  ;;  %v3435_v16 = vld [vmem:[#allocation8 + $0x24] ss:$16 sps:$4 sm:$0xff]   ;;  %1993 = vmatprep.subr.bf16.mxu1 %v3432_v14  ;;  %v3437_v20 = vld [vmem:[#allocation8 + $0x20] ss:$16 sps:$4 sm:$0xff]   ;;  %v3010_v26 = vcombine.high %v115_v21, %v119_v22  ;;  %v127_v27 = vld [vmem:[#allocation5 + $0x70] sm:$0xff]  ;;  %v3009_v30 = vcombine.low %v115_v21, %v119_v22 }
  0x75   :  { %257 = vmatprep.subr.bf16.mxu0 %v3014_v7  ;;  %1994 = vmatpush1.bf16.msra.mxu1 %v3434_v15  ;;  %v3438_v23 = vld [vmem:[#allocation8 + $0x44] ss:$16 sps:$4 sm:$0xff]   ;;  %v3443_v28 = vld [vmem:[#allocation8 + $0x40] ss:$16 sps:$4 sm:$0xff]   ;;  %v3018_v31 = vcombine.high %v123_v25, %v127_v27  ;;  %v3017_v36 = vcombine.low %v123_v25, %v127_v27 }
  0x76   :  { %1995 = vmatprep.subr.bf16.mxu1 %v3435_v16  ;;  %v3444_v29 = vld [vmem:[#allocation8 + $0x64] ss:$16 sps:$4 sm:$0xff]   ;;  %v3449_v32 = vld [vmem:[#allocation8 + $0x60] ss:$16 sps:$4 sm:$0xff]  }
  0x77   :  { %v116_v33 = vld [vmem:[#allocation5 + $0x18] sm:$0xff] }
  0x78   :  { %258 = vmatpush1.bf16.msra.mxu0 %v3013_v10  ;;  %v120_v34 = vld [vmem:[#allocation5 + $0x38] sm:$0xff] }
  0x79   :  { %296 = vmatprep.subr.bf16.mxu0 %v3008_v11  ;;  %1996 = vmatpush1.bf16.msra.mxu1 %v3437_v20  ;;  %v3450_v35 = vld [vmem:[#allocation8 + $0x84] ss:$16 sps:$4 sm:$0xff]   ;;  %v3012_v38 = vcombine.high %v116_v33, %v120_v34  ;;  %v3455_v40 = vld [vmem:[#allocation8 + $0x80] ss:$16 sps:$4 sm:$0xff]   ;;  %v3011_v42 = vcombine.low %v116_v33, %v120_v34 }
  0x7a   :  { %1997 = vmatprep.subr.bf16.mxu1 %v3438_v23  ;;  %v124_v37 = vld [vmem:[#allocation5 + $0x58] sm:$0xff] }
  0x7b   :  { %3021 = vmatmul.mubr.msk.bf16.vlgmr.msra.gmra.mrb[0].mxu0 %vm251_vm0, %v4231_v17  ;;  %v128_v39 = vld [vmem:[#allocation5 + $0x78] sm:$0xff] }
  0x7c   :  { %297 = vmatpush1.bf16.msra.mxu0 %v3007_v18  ;;  %328 = vmatprep.mubr.bf16.mxu0 %v4106_v0  ;;  %v3456_v41 = vld [vmem:[#allocation8 + $0xa4] ss:$16 sps:$4 sm:$0xff]   ;;  %v3020_v43 = vcombine.high %v124_v37, %v128_v39  ;;  %v3461_v44 = vld [vmem:[#allocation8 + $0xa0] ss:$16 sps:$4 sm:$0xff]   ;;  %v3019_v46 = vcombine.low %v124_v37, %v128_v39  ;;  %v4249_v39 = vld [vmem:[#allocation7] sm:$0xff] }
  0x7d   :  { %298 = vmatprep.subr.bf16.mxu0 %v3016_v19  ;;  %1998 = vmatpush1.bf16.msra.mxu1 %v3443_v28  ;;  %v3462_v45 = vld [vmem:[#allocation8 + $0xc4] ss:$16 sps:$4 sm:$0xff]   ;;  %v3467_v48 = vld [vmem:[#allocation8 + $0xc0] ss:$16 sps:$4 sm:$0xff]  }
  0x7e   :  { %1999 = vmatprep.subr.bf16.mxu1 %v3444_v29  ;;  %v3442_v47 = vld [vmem:[#allocation8 + $0x204] ss:$16 sps:$4 sm:$0xff]   ;;  %v3440_v50 = vld [vmem:[#allocation8 + $0x200] ss:$16 sps:$4 sm:$0xff]  }
  0x7f   :  { %v3468_v49 = vld [vmem:[#allocation8 + $0xe4] ss:$16 sps:$4 sm:$0xff]   ;;  %v3473_v52 = vld [vmem:[#allocation8 + $0xe0] ss:$16 sps:$4 sm:$0xff]  }
  0x80   :  { %299 = vmatpush1.bf16.msra.mxu0 %v3015_v24  ;;  %v3448_v51 = vld [vmem:[#allocation8 + $0x224] ss:$16 sps:$4 sm:$0xff]   ;;  %v3446_v54 = vld [vmem:[#allocation8 + $0x220] ss:$16 sps:$4 sm:$0xff]  }
  0x81   :  { %337 = vmatprep.subr.bf16.mxu0 %v3010_v26  ;;  %2000 = vmatpush1.bf16.msra.mxu1 %v3449_v32  ;;  %v3474_v53 = vld [vmem:[#allocation8 + $0x104] ss:$16 sps:$4 sm:$0xff]   ;;  %v3479_v56 = vld [vmem:[#allocation8 + $0x100] ss:$16 sps:$4 sm:$0xff]  }
  0x82   :  { %2001 = vmatprep.subr.bf16.mxu1 %v3450_v35  ;;  %v3454_v55 = vld [vmem:[#allocation8 + $0x244] ss:$16 sps:$4 sm:$0xff]   ;;  %v3452_v58 = vld [vmem:[#allocation8 + $0x240] ss:$16 sps:$4 sm:$0xff]  }
  0x83   :  { %3022 = vmatmul.mubr.msk.bf16.vlgmr.msra.gmra.mrb[4].mxu0 %vm251_vm0, %v4231_v17  ;;  %v3480_v57 = vld [vmem:[#allocation8 + $0x124] ss:$16 sps:$4 sm:$0xff]   ;;  %v3485_v60 = vld [vmem:[#allocation8 + $0x120] ss:$16 sps:$4 sm:$0xff]  }
  0x84   :  { %338 = vmatpush1.bf16.msra.mxu0 %v3009_v30  ;;  %369 = vmatprep.mubr.bf16.mxu0 %v4106_v0  ;;  %v3460_v59 = vld [vmem:[#allocation8 + $0x264] ss:$16 sps:$4 sm:$0xff]   ;;  %v3458_v62 = vld [vmem:[#allocation8 + $0x260] ss:$16 sps:$4 sm:$0xff]  }
  0x85   :  { %339 = vmatprep.subr.bf16.mxu0 %v3018_v31  ;;  %2002 = vmatpush1.bf16.msra.mxu1 %v3455_v40  ;;  %v3486_v61 = vld [vmem:[#allocation8 + $0x144] ss:$16 sps:$4 sm:$0xff]   ;;  %v3464_v2 = vld [vmem:[#allocation8 + $0x280] ss:$16 sps:$4 sm:$0xff]   ;;  %v3527_v31 = vld [vmem:[#allocation8 + $0xc] ss:$16 sps:$4 sm:$0xff]  }
  0x86   :  { %2003 = vmatprep.subr.bf16.mxu1 %v3456_v41  ;;  %v3466_v63 = vld [vmem:[#allocation8 + $0x284] ss:$16 sps:$4 sm:$0xff]   ;;  %v3497_v4 = vld [vmem:[#allocation8 + $0x160] ss:$16 sps:$4 sm:$0xff]  }
  0x87   :  { %v3492_v1 = vld [vmem:[#allocation8 + $0x164] ss:$16 sps:$4 sm:$0xff]   ;;  %v3470_v6 = vld [vmem:[#allocation8 + $0x2a0] ss:$16 sps:$4 sm:$0xff]  }
  0x88   :  { %340 = vmatpush1.bf16.msra.mxu0 %v3017_v36  ;;  %v3472_v3 = vld [vmem:[#allocation8 + $0x2a4] ss:$16 sps:$4 sm:$0xff]   ;;  %v3503_v8 = vld [vmem:[#allocation8 + $0x180] ss:$16 sps:$4 sm:$0xff]   ;;  %v131_v36 = vlaneseq }
  0x89   :  { %378 = vmatprep.subr.bf16.mxu0 %v3012_v38  ;;  %2004 = vmatpush1.bf16.msra.mxu1 %v3461_v44  ;;  %v3498_v5 = vld [vmem:[#allocation8 + $0x184] ss:$16 sps:$4 sm:$0xff]   ;;  %v3476_v10 = vld [vmem:[#allocation8 + $0x2c0] ss:$16 sps:$4 sm:$0xff]  }
  0x8a   :  { %2005 = vmatprep.subr.bf16.mxu1 %v3462_v45  ;;  %v3478_v7 = vld [vmem:[#allocation8 + $0x2c4] ss:$16 sps:$4 sm:$0xff]   ;;  %v3509_v12 = vld [vmem:[#allocation8 + $0x1a0] ss:$16 sps:$4 sm:$0xff]   ;;  %v4244_v37 = vshrl.u32 %v131_v36, 7 }
  0x8b   :  { %3023 = vmatmul.mubr.msk.bf16.vlgmr.msra.gmra.mrb[8].mxu0 %vm251_vm0, %v4231_v17  ;;  %v3504_v9 = vld [vmem:[#allocation8 + $0x1a4] ss:$16 sps:$4 sm:$0xff]   ;;  %v3482_v13 = vld [vmem:[#allocation8 + $0x2e0] ss:$16 sps:$4 sm:$0xff]  }
  0x8c   :  { %379 = vmatpush1.bf16.msra.mxu0 %v3011_v42  ;;  %410 = vmatprep.mubr.bf16.mxu0 %v4106_v0  ;;  %v3491_v0 = vld [vmem:[#allocation8 + $0x140] ss:$16 sps:$4 sm:$0xff]   ;;  %v3484_v11 = vld [vmem:[#allocation8 + $0x2e4] ss:$16 sps:$4 sm:$0xff]   ;;  %v4247_v38 = vsub.s32 0, %v4244_v37  ;;  %v4252_v40 = vsub.s32 1, %v4244_v37 }
  0x8d   :  { %380 = vmatprep.subr.bf16.mxu0 %v3020_v43  ;;  %2006 = vmatpush1.bf16.msra.mxu1 %v3467_v48  ;;  %v3490_v14 = vld [vmem:[#allocation8 + $0x304] ss:$16 sps:$4 sm:$0xff]   ;;  %v3488_v15 = vld [vmem:[#allocation8 + $0x300] ss:$16 sps:$4 sm:$0xff]  }
  0x8e   :  { %2007 = vmatprep.subr.bf16.mxu1 %v3468_v49  ;;  %v3496_v16 = vld [vmem:[#allocation8 + $0x324] ss:$16 sps:$4 sm:$0xff]   ;;  %v3500_v19 = vld [vmem:[#allocation8 + $0x340] ss:$16 sps:$4 sm:$0xff]   ;;  %v134_v41 = vrot.slane %v4249_v39, %v4247_v38  ;;  %v138_v42 = vrot.slane %v4249_v39, %v4252_v40  ;;  %v145_v49 = vsub.s32 3, %v4244_v37 }
  0x8f   :  { %v3502_v18 = vld [vmem:[#allocation8 + $0x344] ss:$16 sps:$4 sm:$0xff]   ;;  %v3506_v21 = vld [vmem:[#allocation8 + $0x360] ss:$16 sps:$4 sm:$0xff]  }
  0x90   :  { %381 = vmatpush1.bf16.msra.mxu0 %v3019_v46  ;;  %v3508_v20 = vld [vmem:[#allocation8 + $0x364] ss:$16 sps:$4 sm:$0xff]   ;;  %v3512_v24 = vld [vmem:[#allocation8 + $0x380] ss:$16 sps:$4 sm:$0xff]   ;;  %v141_v46 = vsub.s32 2, %v4244_v37 }
  0x91   :  { %2034 = vmatprep.subr.bf16.mxu0 %v3442_v47  ;;  %2008 = vmatpush1.bf16.msra.mxu1 %v3473_v52  ;;  %v3510_v22 = vld [vmem:[#allocation8 + $0x1c4] ss:$16 sps:$4 sm:$0xff]   ;;  %v3515_v25 = vld [vmem:[#allocation8 + $0x1c0] ss:$16 sps:$4 sm:$0xff]  }
  0x92   :  { %2009 = vmatprep.subr.bf16.mxu1 %v3474_v53  ;;  %v3514_v23 = vld [vmem:[#allocation8 + $0x384] ss:$16 sps:$4 sm:$0xff]   ;;  %v3518_v28 = vld [vmem:[#allocation8 + $0x3a0] ss:$16 sps:$4 sm:$0xff]   ;;  %v142_v53 = vrot.slane %v4249_v39, %v141_v46 }
  0x93   :  { %3024 = vmatmul.mubr.msk.bf16.vlgmr.msra.gmra.mrb[12].mxu0 %vm251_vm0, %v4231_v17  ;;  %v3494_v17 = vld [vmem:[#allocation8 + $0x320] ss:$16 sps:$4 sm:$0xff]   ;;  %v3516_v26 = vld [vmem:[#allocation8 + $0x1e4] ss:$16 sps:$4 sm:$0xff]  }
  0x94   :  { %2035 = vmatpush1.bf16.msra.mxu0 %v3440_v50  ;;  %v3520_v27 = vld [vmem:[#allocation8 + $0x3a4] ss:$16 sps:$4 sm:$0xff]   ;;  %v3521_v29 = vld [vmem:[#allocation8 + $0x1e0] ss:$16 sps:$4 sm:$0xff]  }
  0x95   :  { %2036 = vmatprep.subr.bf16.mxu0 %v3448_v51  ;;  %2010 = vmatpush1.bf16.msra.mxu1 %v3479_v56  ;;  %v3524_v30 = vld [vmem:[#allocation8 + $0x3c4] ss:$16 sps:$4 sm:$0xff]   ;;  %v3522_v32 = vld [vmem:[#allocation8 + $0x3c0] ss:$16 sps:$4 sm:$0xff]   ;;  %v146_v56 = vrot.slane %v4249_v39, %v145_v49 }
  0x96   :  { %2011 = vmatprep.subr.bf16.mxu1 %v3480_v57  ;;  %v3530_v33 = vld [vmem:[#allocation8 + $0x3e4] ss:$16 sps:$4 sm:$0xff]   ;;  %v3528_v34 = vld [vmem:[#allocation8 + $0x3e0] ss:$16 sps:$4 sm:$0xff]  }
  0x97   :  { %v3536_v35 = vld [vmem:[#allocation8 + $0x404] ss:$16 sps:$4 sm:$0xff]   ;;  %v3558_v36 = vld [vmem:[#allocation8 + $0x480] ss:$16 sps:$4 sm:$0xff]  }
  0x98   :  { %2037 = vmatpush1.bf16.msra.mxu0 %v3446_v54 }
  0x99   :  { %2038 = vmatprep.subr.bf16.mxu0 %v3454_v55  ;;  %2012 = vmatpush1.bf16.msra.mxu1 %v3485_v60  ;;  %v3525_v55 = vld [vmem:[#allocation8 + $0x8] ss:$16 sps:$4 sm:$0xff]  }
  0x9a   :  { %2013 = vmatprep.subr.bf16.mxu1 %v3486_v61 }
  0x9c   :  { %2039 = vmatpush1.bf16.msra.mxu0 %v3452_v58  ;;  %v3533_v58 = vld [vmem:[#allocation8 + $0x2c] ss:$16 sps:$4 sm:$0xff]  }
  0x9d   :  { %2040 = vmatprep.subr.bf16.mxu0 %v3460_v59  ;;  %2014 = vmatpush1.bf16.msra.mxu1 %v3491_v0 }
  0x9e   :  { %2015 = vmatprep.subr.bf16.mxu1 %v3492_v1  ;;  %v153_v1 = vsub.s32 5, %v4244_v37 }
  0xa0   :  { %2041 = vmatpush1.bf16.msra.mxu0 %v3458_v62 }
  0xa1   :  { %2042 = vmatprep.subr.bf16.mxu0 %v3466_v63  ;;  %2016 = vmatpush1.bf16.msra.mxu1 %v3497_v4  ;;  %v3531_v63 = vld [vmem:[#allocation8 + $0x28] ss:$16 sps:$4 sm:$0xff]  }
  0xa2   :  { %2017 = vmatprep.subr.bf16.mxu1 %v3498_v5 }
  0xa4   :  { %2043 = vmatpush1.bf16.msra.mxu0 %v3464_v2 }
  0xa5   :  { %2044 = vmatprep.subr.bf16.mxu0 %v3472_v3  ;;  %2018 = vmatpush1.bf16.msra.mxu1 %v3503_v8  ;;  %v3539_v3 = vld [vmem:[#allocation8 + $0x4c] ss:$16 sps:$4 sm:$0xff]   ;;  %v3534_v8 = vld [vmem:[#allocation8 + $0x400] ss:$16 sps:$4 sm:$0xff]  }
  0xa6   :  { %2019 = vmatprep.subr.bf16.mxu1 %v3504_v9  ;;  %v3537_v9 = vld [vmem:[#allocation8 + $0x48] ss:$16 sps:$4 sm:$0xff]  }
  0xa8   :  { %2045 = vmatpush1.bf16.msra.mxu0 %v3470_v6 }
  0xa9   :  { %2046 = vmatprep.subr.bf16.mxu0 %v3478_v7  ;;  %2020 = vmatpush1.bf16.msra.mxu1 %v3509_v12  ;;  %v3545_v12 = vld [vmem:[#allocation8 + $0x6c] ss:$16 sps:$4 sm:$0xff]  }
  0xaa   :  { %2021 = vmatprep.subr.bf16.mxu1 %v3510_v22 }
  0xac   :  { %2047 = vmatpush1.bf16.msra.mxu0 %v3476_v10  ;;  %v154_v10 = vrot.slane %v4249_v39, %v153_v1  ;;  %v3596_v1 = vld [vmem:[#allocation8 + $0x544] ss:$16 sps:$4 sm:$0xff]  }
  0xad   :  { %2048 = vmatprep.subr.bf16.mxu0 %v3484_v11  ;;  %2022 = vmatpush1.bf16.msra.mxu1 %v3515_v25  ;;  %v3542_v11 = vld [vmem:[#allocation8 + $0x424] ss:$16 sps:$4 sm:$0xff]  }
  0xae   :  { %2023 = vmatprep.subr.bf16.mxu1 %v3516_v26  ;;  %v3554_v26 = vld [vmem:[#allocation8 + $0x464] ss:$16 sps:$4 sm:$0xff]  }
  0xb0   :  { %2049 = vmatpush1.bf16.msra.mxu0 %v3482_v13 }
  0xb1   :  { %2050 = vmatprep.subr.bf16.mxu0 %v3490_v14  ;;  %2024 = vmatpush1.bf16.msra.mxu1 %v3521_v29 }
  0xb2   :  { %2157 = vmatprep.subr.bf16.mxu1 %v3527_v31  ;;  %v3555_v31 = vld [vmem:[#allocation8 + $0xa8] ss:$16 sps:$4 sm:$0xff]  }
  0xb4   :  { %2051 = vmatpush1.bf16.msra.mxu0 %v3488_v15  ;;  %v3540_v15 = vld [vmem:[#allocation8 + $0x420] ss:$16 sps:$4 sm:$0xff]  }
  0xb5   :  { %2052 = vmatprep.subr.bf16.mxu0 %v3496_v16  ;;  %v3543_v16 = vld [vmem:[#allocation8 + $0x68] ss:$16 sps:$4 sm:$0xff]  }
  0xb8   :  { %2053 = vmatpush1.bf16.msra.mxu0 %v3494_v17 }
  0xb9   :  { %2054 = vmatprep.subr.bf16.mxu0 %v3502_v18 }
  0xbc   :  { %2055 = vmatpush1.bf16.msra.mxu0 %v3500_v19  ;;  %v3548_v19 = vld [vmem:[#allocation8 + $0x444] ss:$16 sps:$4 sm:$0xff]  }
  0xbd   :  { %2056 = vmatprep.subr.bf16.mxu0 %v3508_v20  ;;  %v3551_v20 = vld [vmem:[#allocation8 + $0x8c] ss:$16 sps:$4 sm:$0xff]  }
  0xc0   :  { %2057 = vmatpush1.bf16.msra.mxu0 %v3506_v21 }
  0xc1   :  { %2058 = vmatprep.subr.bf16.mxu0 %v3514_v23  ;;  %v3546_v23 = vld [vmem:[#allocation8 + $0x440] ss:$16 sps:$4 sm:$0xff]  }
  0xc4   :  { %2059 = vmatpush1.bf16.msra.mxu0 %v3512_v24  ;;  %v3549_v24 = vld [vmem:[#allocation8 + $0x88] ss:$16 sps:$4 sm:$0xff]  }
  0xc5   :  { %2060 = vmatprep.subr.bf16.mxu0 %v3520_v27  ;;  %v3557_v27 = vld [vmem:[#allocation8 + $0xac] ss:$16 sps:$4 sm:$0xff]  }
  0xc8   :  { %2061 = vmatpush1.bf16.msra.mxu0 %v3518_v28 }
  0xc9   :  { %2062 = vmatprep.subr.bf16.mxu0 %v3524_v30  ;;  %v3552_v30 = vld [vmem:[#allocation8 + $0x460] ss:$16 sps:$4 sm:$0xff]  }
  0xcc   :  { %2063 = vmatpush1.bf16.msra.mxu0 %v3522_v32 }
  0xcd   :  { %2064 = vmatprep.subr.bf16.mxu0 %v3530_v33  ;;  %v3560_v33 = vld [vmem:[#allocation8 + $0x484] ss:$16 sps:$4 sm:$0xff]  }
  0xd0   :  { %2065 = vmatpush1.bf16.msra.mxu0 %v3528_v34  ;;  %v3563_v34 = vld [vmem:[#allocation8 + $0xcc] ss:$16 sps:$4 sm:$0xff]  }
  0xd1   :  { %2075 = vmatprep.subr.bf16.mxu0 %v3536_v35 }
 0x14e   :  { %v289_v43 = vpop.f32.mrb[0].mxu0 }
 0x14f   :  { %v290_v44 = vadd.f32 %v289_v43, %v134_v41  ;;  %v291_v45 = vpop.f32.mrb[1].mxu0  ;;  %v3561_v41 = vld [vmem:[#allocation8 + $0xc8] ss:$16 sps:$4 sm:$0xff]   ;;  %v3569_v43 = vld [vmem:[#allocation8 + $0xec] ss:$16 sps:$4 sm:$0xff]  }
 0x150   :  { %v292_v47 = vadd.f32 %v291_v45, %v138_v42  ;;  %v293_v48 = vpop.f32.mrb[2].mxu0  ;;  %v3566_v42 = vld [vmem:[#allocation8 + $0x4a4] ss:$16 sps:$4 sm:$0xff]   ;;  %v3567_v45 = vld [vmem:[#allocation8 + $0xe8] ss:$16 sps:$4 sm:$0xff]  }
 0x151   :  { %v419_v50 = vmax.f32 %v290_v44, 0.0  ;;  %v294_v51 = vpop.f32.mrb[3].mxu0  ;;  %v3564_v44 = vld [vmem:[#allocation8 + $0x4a0] ss:$16 sps:$4 sm:$0xff]   ;;  %v3575_v48 = vld [vmem:[#allocation8 + $0x10c] ss:$16 sps:$4 sm:$0xff]  }
 0x152   :  { %v420_v52 = vmax.f32 %v292_v47, 0.0  ;;  %v3572_v47 = vld [vmem:[#allocation8 + $0x4c4] ss:$16 sps:$4 sm:$0xff]   ;;  %v3573_v51 = vld [vmem:[#allocation8 + $0x108] ss:$16 sps:$4 sm:$0xff]  }
 0x153   :  { %v4266_v57 = vpack.c.bf16 %v419_v50, %v419_v50  ;;  %v3570_v50 = vld [vmem:[#allocation8 + $0x4c0] ss:$16 sps:$4 sm:$0xff]  }
 0x154   :  { %v428_v54 = vpack.c.bf16 %v420_v52, %v420_v52  ;;  %v3578_v52 = vld [vmem:[#allocation8 + $0x4e4] ss:$16 sps:$4 sm:$0xff]  }
 0x156   :  { %v330_v59 = vpop.f32.mrb[4].mxu0  ;;  %2025 = vmatprep.mubr.bf16.mxu1 %v428_v54 }
 0x157   :  { %v331_v60 = vadd.f32 %v330_v59, %v142_v53  ;;  %v332_v61 = vpop.f32.mrb[5].mxu0  ;;  %2026 = vmatmul.mubr.bf16.vlgmr.msra.gmra.mrb[0].mxu1 %v4266_v57  ;;  %v3581_v53 = vld [vmem:[#allocation8 + $0x12c] ss:$16 sps:$4 sm:$0xff]   ;;  %v3582_v59 = vld [vmem:[#allocation8 + $0x500] ss:$16 sps:$4 sm:$0xff]  }
 0x158   :  { %v333_v62 = vadd.f32 %v332_v61, %v146_v56  ;;  %2158 = vmatpush1.bf16.msra.mxu1 %v3525_v55  ;;  %2189 = vmatprep.mubr.bf16.mxu1 %v428_v54  ;;  %v334_v0 = vpop.f32.mrb[6].mxu0  ;;  %v3576_v54 = vld [vmem:[#allocation8 + $0x4e0] ss:$16 sps:$4 sm:$0xff]   ;;  %v3579_v55 = vld [vmem:[#allocation8 + $0x128] ss:$16 sps:$4 sm:$0xff]  }
 0x159   :  { %v421_v2 = vmax.f32 %v331_v60, 0.0  ;;  %2159 = vmatprep.subr.bf16.mxu1 %v3533_v58  ;;  %v335_v4 = vpop.f32.mrb[7].mxu0  ;;  %v3584_v56 = vld [vmem:[#allocation8 + $0x504] ss:$16 sps:$4 sm:$0xff]   ;;  %v3587_v58 = vld [vmem:[#allocation8 + $0x14c] ss:$16 sps:$4 sm:$0xff]  }
 0x15a   :  { %v422_v5 = vmax.f32 %v333_v62, 0.0  ;;  %v3585_v60 = vld [vmem:[#allocation8 + $0x148] ss:$16 sps:$4 sm:$0xff]   ;;  %v3590_v61 = vld [vmem:[#allocation8 + $0x524] ss:$16 sps:$4 sm:$0xff]  }
 0x15b   :  { %v4270_v6 = vpack.c.bf16 %v421_v2, %v421_v2  ;;  %v3593_v62 = vld [vmem:[#allocation8 + $0x16c] ss:$16 sps:$4 sm:$0xff]   ;;  %v3591_v0 = vld [vmem:[#allocation8 + $0x168] ss:$16 sps:$4 sm:$0xff]  }
 0x15c   :  { %v4272_v7 = vpack.c.bf16 %v422_v5, %v422_v5  ;;  %2160 = vmatpush1.bf16.msra.mxu1 %v3531_v63  ;;  %v3588_v63 = vld [vmem:[#allocation8 + $0x520] ss:$16 sps:$4 sm:$0xff]   ;;  %v3599_v2 = vld [vmem:[#allocation8 + $0x18c] ss:$16 sps:$4 sm:$0xff]   ;;  %v3597_v4 = vld [vmem:[#allocation8 + $0x188] ss:$16 sps:$4 sm:$0xff]  }
 0x15d   :  { %2161 = vmatprep.subr.bf16.mxu1 %v3539_v3  ;;  %v3594_v3 = vld [vmem:[#allocation8 + $0x540] ss:$16 sps:$4 sm:$0xff]   ;;  %v3602_v5 = vld [vmem:[#allocation8 + $0x564] ss:$16 sps:$4 sm:$0xff]  }
 0x15e   :  { %2066 = vmatprep.mubr.bf16.mxu0 %v4272_v7  ;;  %v4276_v13 = vpop.f32.mrb[8].mxu0 }
 0x15f   :  { %2067 = vmatmul.mubr.bf16.vlgmr.msra.gmra.mrb[16].mxu0 %v4270_v6  ;;  %v373_v14 = vpop.f32.mrb[9].mxu0 }
 0x160   :  { %2076 = vmatpush1.bf16.msra.mxu0 %v3534_v8  ;;  %2162 = vmatpush1.bf16.msra.mxu1 %v3537_v9  ;;  %v374_v17 = vadd.f32 %v373_v14, %v154_v10  ;;  %v375_v18 = vpop.f32.mrb[10].mxu0  ;;  %v3605_v8 = vld [vmem:[#allocation8 + $0x1ac] ss:$16 sps:$4 sm:$0xff]   ;;  %v3600_v9 = vld [vmem:[#allocation8 + $0x560] ss:$16 sps:$4 sm:$0xff]   ;;  %v149_v14 = vsub.s32 4, %v4244_v37 }
 0x161   :  { %2077 = vmatprep.subr.bf16.mxu0 %v3542_v11  ;;  %2163 = vmatprep.subr.bf16.mxu1 %v3545_v12  ;;  %v376_v21 = vpop.f32.mrb[11].mxu0  ;;  %v3603_v10 = vld [vmem:[#allocation8 + $0x1a8] ss:$16 sps:$4 sm:$0xff]   ;;  %v3608_v11 = vld [vmem:[#allocation8 + $0x584] ss:$16 sps:$4 sm:$0xff]  }
 0x162   :  { %v424_v22 = vmax.f32 %v374_v17, 0.0  ;;  %v3611_v12 = vld [vmem:[#allocation8 + $0x1cc] ss:$16 sps:$4 sm:$0xff]   ;;  %v3614_v17 = vld [vmem:[#allocation8 + $0x5a4] ss:$16 sps:$4 sm:$0xff]  }
 0x163   :  { %v3617_v18 = vld [vmem:[#allocation8 + $0x1ec] ss:$16 sps:$4 sm:$0xff]   ;;  %v3612_v21 = vld [vmem:[#allocation8 + $0x5a0] ss:$16 sps:$4 sm:$0xff]  }
 0x164   :  { %2078 = vmatpush1.bf16.msra.mxu0 %v3540_v15  ;;  %2164 = vmatpush1.bf16.msra.mxu1 %v3543_v16  ;;  %v4279_v25 = vpack.c.bf16 %v424_v22, %v424_v22  ;;  %v3606_v15 = vld [vmem:[#allocation8 + $0x580] ss:$16 sps:$4 sm:$0xff]   ;;  %v3609_v16 = vld [vmem:[#allocation8 + $0x1c8] ss:$16 sps:$4 sm:$0xff]  }
 0x165   :  { %2079 = vmatprep.subr.bf16.mxu0 %v3548_v19  ;;  %2165 = vmatprep.subr.bf16.mxu1 %v3551_v20  ;;  %v161_v19 = vsub.s32 7, %v4244_v37  ;;  %v150_v20 = vrot.slane %v4249_v39, %v149_v14  ;;  %v3615_v22 = vld [vmem:[#allocation8 + $0x1e8] ss:$16 sps:$4 sm:$0xff]  }
 0x166   :  { %2107 = vmatprep.mubr.bf16.mxu0 %v4279_v25  ;;  %v4282_v28 = vpop.f32.mrb[12].mxu0  ;;  %v3675_v14 = vld [vmem:[#allocation8 + $0x328] ss:$16 sps:$4 sm:$0xff]  }
 0x167   :  { %v4284_v29 = vpop.f32.mrb[13].mxu0 }
 0x168   :  { %2080 = vmatpush1.bf16.msra.mxu0 %v3546_v23  ;;  %2166 = vmatpush1.bf16.msra.mxu1 %v3549_v24  ;;  %v416_v32 = vpop.f32.mrb[14].mxu0  ;;  %v3620_v23 = vld [vmem:[#allocation8 + $0x5c4] ss:$16 sps:$4 sm:$0xff]   ;;  %v3623_v24 = vld [vmem:[#allocation8 + $0x20c] ss:$16 sps:$4 sm:$0xff]  }
 0x169   :  { %2081 = vmatprep.subr.bf16.mxu0 %v3554_v26  ;;  %2167 = vmatprep.subr.bf16.mxu1 %v3557_v27  ;;  %v417_v35 = vpop.f32.mrb[15].mxu0  ;;  %v162_v26 = vrot.slane %v4249_v39, %v161_v19  ;;  %v372_v27 = vadd.f32 %v4276_v13, %v150_v20  ;;  %v3626_v32 = vld [vmem:[#allocation8 + $0x5e4] ss:$16 sps:$4 sm:$0xff]   ;;  %v3689_v20 = vld [vmem:[#allocation8 + $0x36c] ss:$16 sps:$4 sm:$0xff]  }
 0x16a   :  { %v3632_v13 = vld [vmem:[#allocation8 + $0x604] ss:$16 sps:$4 sm:$0xff]  }
 0x16b   :  { %v423_v35 = vmax.f32 %v372_v27, 0.0  ;;  %v3686_v19 = vld [vmem:[#allocation8 + $0x724] ss:$16 sps:$4 sm:$0xff]   ;;  %v3693_v27 = vld [vmem:[#allocation8 + $0x388] ss:$16 sps:$4 sm:$0xff]  }
 0x16c   :  { %2082 = vmatpush1.bf16.msra.mxu0 %v3552_v30  ;;  %2168 = vmatpush1.bf16.msra.mxu1 %v3555_v31  ;;  %v3618_v30 = vld [vmem:[#allocation8 + $0x5c0] ss:$16 sps:$4 sm:$0xff]   ;;  %v3621_v31 = vld [vmem:[#allocation8 + $0x208] ss:$16 sps:$4 sm:$0xff]  }
 0x16d   :  { %2083 = vmatprep.subr.bf16.mxu0 %v3560_v33  ;;  %2169 = vmatprep.subr.bf16.mxu1 %v3563_v34  ;;  %v3629_v33 = vld [vmem:[#allocation8 + $0x22c] ss:$16 sps:$4 sm:$0xff]   ;;  %v415_v34 = vadd.f32 %v4284_v29, %v162_v26  ;;  %v3633_v29 = vld [vmem:[#allocation8 + $0x248] ss:$16 sps:$4 sm:$0xff]   ;;  %v3690_v26 = vld [vmem:[#allocation8 + $0x740] ss:$16 sps:$4 sm:$0xff]  }
 0x170   :  { %2084 = vmatpush1.bf16.msra.mxu0 %v3558_v36  ;;  %2170 = vmatpush1.bf16.msra.mxu1 %v3561_v41  ;;  %v3624_v36 = vld [vmem:[#allocation8 + $0x5e0] ss:$16 sps:$4 sm:$0xff]   ;;  %v3627_v41 = vld [vmem:[#allocation8 + $0x228] ss:$16 sps:$4 sm:$0xff]  }
 0x171   :  { %2085 = vmatprep.subr.bf16.mxu0 %v3566_v42  ;;  %2171 = vmatprep.subr.bf16.mxu1 %v3569_v43  ;;  %v3635_v42 = vld [vmem:[#allocation8 + $0x24c] ss:$16 sps:$4 sm:$0xff]   ;;  %v426_v43 = vmax.f32 %v415_v34, 0.0  ;;  %v3704_v34 = vld [vmem:[#allocation8 + $0x784] ss:$16 sps:$4 sm:$0xff]  }
 0x174   :  { %2086 = vmatpush1.bf16.msra.mxu0 %v3564_v44  ;;  %2172 = vmatpush1.bf16.msra.mxu1 %v3567_v45  ;;  %v4294_v44 = vpack.c.bf16 %v423_v35, %v423_v35  ;;  %v3630_v45 = vld [vmem:[#allocation8 + $0x600] ss:$16 sps:$4 sm:$0xff]   ;;  %v3707_v35 = vld [vmem:[#allocation8 + $0x3cc] ss:$16 sps:$4 sm:$0xff]  }
 0x175   :  { %2087 = vmatprep.subr.bf16.mxu0 %v3572_v47  ;;  %2173 = vmatprep.subr.bf16.mxu1 %v3575_v48  ;;  %v3641_v47 = vld [vmem:[#allocation8 + $0x26c] ss:$16 sps:$4 sm:$0xff]   ;;  %v4296_v48 = vpack.c.bf16 %v426_v43, %v426_v43 }
 0x176   :  { %v3713_v43 = vld [vmem:[#allocation8 + $0x3ec] ss:$16 sps:$4 sm:$0xff]  }
 0x178   :  { %2088 = vmatpush1.bf16.msra.mxu0 %v3570_v50  ;;  %2174 = vmatpush1.bf16.msra.mxu1 %v3573_v51  ;;  %v3639_v50 = vld [vmem:[#allocation8 + $0x268] ss:$16 sps:$4 sm:$0xff]   ;;  %v3644_v51 = vld [vmem:[#allocation8 + $0x644] ss:$16 sps:$4 sm:$0xff]  }
 0x179   :  { %2089 = vmatprep.subr.bf16.mxu0 %v3578_v52  ;;  %2175 = vmatprep.subr.bf16.mxu1 %v3581_v53  ;;  %v3647_v52 = vld [vmem:[#allocation8 + $0x28c] ss:$16 sps:$4 sm:$0xff]   ;;  %v3642_v53 = vld [vmem:[#allocation8 + $0x640] ss:$16 sps:$4 sm:$0xff]  }
 0x17c   :  { %2090 = vmatpush1.bf16.msra.mxu0 %v3576_v54  ;;  %2176 = vmatpush1.bf16.msra.mxu1 %v3579_v55  ;;  %v3645_v54 = vld [vmem:[#allocation8 + $0x288] ss:$16 sps:$4 sm:$0xff]   ;;  %v3650_v55 = vld [vmem:[#allocation8 + $0x664] ss:$16 sps:$4 sm:$0xff]  }
 0x17d   :  { %2091 = vmatprep.subr.bf16.mxu0 %v3584_v56  ;;  %2177 = vmatprep.subr.bf16.mxu1 %v3587_v58  ;;  %v3653_v56 = vld [vmem:[#allocation8 + $0x2ac] ss:$16 sps:$4 sm:$0xff]   ;;  %v3648_v58 = vld [vmem:[#allocation8 + $0x660] ss:$16 sps:$4 sm:$0xff]  }
 0x180   :  { %2092 = vmatpush1.bf16.msra.mxu0 %v3582_v59  ;;  %2178 = vmatpush1.bf16.msra.mxu1 %v3585_v60  ;;  %v3651_v59 = vld [vmem:[#allocation8 + $0x2a8] ss:$16 sps:$4 sm:$0xff]   ;;  %v3656_v60 = vld [vmem:[#allocation8 + $0x684] ss:$16 sps:$4 sm:$0xff]  }
 0x181   :  { %2093 = vmatprep.subr.bf16.mxu0 %v3590_v61  ;;  %2179 = vmatprep.subr.bf16.mxu1 %v3593_v62  ;;  %v3659_v61 = vld [vmem:[#allocation8 + $0x2cc] ss:$16 sps:$4 sm:$0xff]   ;;  %v3654_v62 = vld [vmem:[#allocation8 + $0x680] ss:$16 sps:$4 sm:$0xff]  }
 0x184   :  { %2094 = vmatpush1.bf16.msra.mxu0 %v3588_v63  ;;  %2180 = vmatpush1.bf16.msra.mxu1 %v3591_v0  ;;  %v3657_v63 = vld [vmem:[#allocation8 + $0x2c8] ss:$16 sps:$4 sm:$0xff]   ;;  %v3662_v0 = vld [vmem:[#allocation8 + $0x6a4] ss:$16 sps:$4 sm:$0xff]  }
 0x185   :  { %2095 = vmatprep.subr.bf16.mxu0 %v3596_v1  ;;  %2181 = vmatprep.subr.bf16.mxu1 %v3599_v2  ;;  %v3665_v1 = vld [vmem:[#allocation8 + $0x2ec] ss:$16 sps:$4 sm:$0xff]   ;;  %v3660_v2 = vld [vmem:[#allocation8 + $0x6a0] ss:$16 sps:$4 sm:$0xff]  }
 0x188   :  { %2096 = vmatpush1.bf16.msra.mxu0 %v3594_v3  ;;  %2182 = vmatpush1.bf16.msra.mxu1 %v3597_v4  ;;  %v3663_v3 = vld [vmem:[#allocation8 + $0x2e8] ss:$16 sps:$4 sm:$0xff]   ;;  %v3668_v4 = vld [vmem:[#allocation8 + $0x6c4] ss:$16 sps:$4 sm:$0xff]  }
 0x189   :  { %2097 = vmatprep.subr.bf16.mxu0 %v3602_v5  ;;  %2183 = vmatprep.subr.bf16.mxu1 %v3605_v8  ;;  %v3671_v5 = vld [vmem:[#allocation8 + $0x30c] ss:$16 sps:$4 sm:$0xff]   ;;  %v3666_v8 = vld [vmem:[#allocation8 + $0x6c0] ss:$16 sps:$4 sm:$0xff]  }
 0x18c   :  { %2098 = vmatpush1.bf16.msra.mxu0 %v3600_v9  ;;  %2184 = vmatpush1.bf16.msra.mxu1 %v3603_v10  ;;  %v3669_v9 = vld [vmem:[#allocation8 + $0x308] ss:$16 sps:$4 sm:$0xff]   ;;  %v3674_v10 = vld [vmem:[#allocation8 + $0x6e4] ss:$16 sps:$4 sm:$0xff]  }
 0x18d   :  { %2099 = vmatprep.subr.bf16.mxu0 %v3608_v11  ;;  %2185 = vmatprep.subr.bf16.mxu1 %v3611_v12  ;;  %v3677_v11 = vld [vmem:[#allocation8 + $0x32c] ss:$16 sps:$4 sm:$0xff]   ;;  %v3672_v12 = vld [vmem:[#allocation8 + $0x6e0] ss:$16 sps:$4 sm:$0xff]  }
 0x190   :  { %2100 = vmatpush1.bf16.msra.mxu0 %v3606_v15  ;;  %2186 = vmatpush1.bf16.msra.mxu1 %v3609_v16  ;;  %v3680_v15 = vld [vmem:[#allocation8 + $0x704] ss:$16 sps:$4 sm:$0xff]   ;;  %v3683_v16 = vld [vmem:[#allocation8 + $0x34c] ss:$16 sps:$4 sm:$0xff]  }
 0x191   :  { %2101 = vmatprep.subr.bf16.mxu0 %v3614_v17  ;;  %2187 = vmatprep.subr.bf16.mxu1 %v3617_v18  ;;  %v3678_v17 = vld [vmem:[#allocation8 + $0x700] ss:$16 sps:$4 sm:$0xff]   ;;  %v3681_v18 = vld [vmem:[#allocation8 + $0x348] ss:$16 sps:$4 sm:$0xff]  }
 0x194   :  { %2102 = vmatpush1.bf16.msra.mxu0 %v3612_v21  ;;  %2188 = vmatpush1.bf16.msra.mxu1 %v3615_v22  ;;  %v3684_v21 = vld [vmem:[#allocation8 + $0x720] ss:$16 sps:$4 sm:$0xff]   ;;  %v3687_v22 = vld [vmem:[#allocation8 + $0x368] ss:$16 sps:$4 sm:$0xff]  }
 0x195   :  { %2103 = vmatprep.subr.bf16.mxu0 %v3620_v23  ;;  %2198 = vmatprep.subr.bf16.mxu1 %v3623_v24  ;;  %v3692_v23 = vld [vmem:[#allocation8 + $0x744] ss:$16 sps:$4 sm:$0xff]   ;;  %v3695_v24 = vld [vmem:[#allocation8 + $0x38c] ss:$16 sps:$4 sm:$0xff]  }
 0x197   :  { %2190 = vmatmul.mubr.bf16.vlgmr.msra.gmra.mrb[4].mxu1 %v4266_v57  ;;  %v3638_v57 = vld [vmem:[#allocation8 + $0x624] ss:$16 sps:$4 sm:$0xff]  }
 0x198   :  { %2104 = vmatpush1.bf16.msra.mxu0 %v3618_v30  ;;  %2199 = vmatpush1.bf16.msra.mxu1 %v3621_v31  ;;  %v3698_v30 = vld [vmem:[#allocation8 + $0x764] ss:$16 sps:$4 sm:$0xff]   ;;  %v3701_v31 = vld [vmem:[#allocation8 + $0x3ac] ss:$16 sps:$4 sm:$0xff]  }
 0x199   :  { %2230 = vmatprep.mubr.bf16.mxu1 %v4272_v7  ;;  %2105 = vmatprep.subr.bf16.mxu0 %v3626_v32  ;;  %v3636_v7 = vld [vmem:[#allocation8 + $0x620] ss:$16 sps:$4 sm:$0xff]  }
 0x19a   :  { %2200 = vmatprep.subr.bf16.mxu1 %v3629_v33  ;;  %v3696_v32 = vld [vmem:[#allocation8 + $0x760] ss:$16 sps:$4 sm:$0xff]   ;;  %v3699_v33 = vld [vmem:[#allocation8 + $0x3a8] ss:$16 sps:$4 sm:$0xff]  }
 0x19c   :  { %2106 = vmatpush1.bf16.msra.mxu0 %v3624_v36  ;;  %2201 = vmatpush1.bf16.msra.mxu1 %v3627_v41  ;;  %v157_v36 = vsub.s32 6, %v4244_v37  ;;  %v3702_v41 = vld [vmem:[#allocation8 + $0x780] ss:$16 sps:$4 sm:$0xff]   ;;  %v3927_v37 = vld [vmem:[#allocation11 + $0x38] sm:$0xff]  }
 0x19d   :  { %2116 = vmatprep.subr.bf16.mxu0 %v3632_v13  ;;  %2202 = vmatprep.subr.bf16.mxu1 %v3635_v42  ;;  %v3705_v13 = vld [vmem:[#allocation8 + $0x3c8] ss:$16 sps:$4 sm:$0xff]   ;;  %v3710_v42 = vld [vmem:[#allocation8 + $0x7a4] ss:$16 sps:$4 sm:$0xff]  }
 0x19f   :  { %2108 = vmatmul.mubr.bf16.vlgmr.msra.gmra.mrb[16].mxu0 %v4294_v44 }
 0x1a0   :  { %2117 = vmatpush1.bf16.msra.mxu0 %v3630_v45  ;;  %2203 = vmatpush1.bf16.msra.mxu1 %v3633_v29  ;;  %v158_v45 = vrot.slane %v4249_v39, %v157_v36  ;;  %v3708_v29 = vld [vmem:[#allocation8 + $0x7a0] ss:$16 sps:$4 sm:$0xff]   ;;  %v3753_v36 = vld [vmem:[#allocation8 + $0x568] ss:$16 sps:$4 sm:$0xff]  }
 0x1a1   :  { %2118 = vmatprep.subr.bf16.mxu0 %v3638_v57  ;;  %2204 = vmatprep.subr.bf16.mxu1 %v3641_v47  ;;  %v3711_v57 = vld [vmem:[#allocation8 + $0x3e8] ss:$16 sps:$4 sm:$0xff]   ;;  %v3716_v47 = vld [vmem:[#allocation8 + $0x7c4] ss:$16 sps:$4 sm:$0xff]   ;;  %v3720_v39 = vld [vmem:[#allocation8 + $0x7e0] ss:$16 sps:$4 sm:$0xff]  }
 0x1a2   :  { %2148 = vmatprep.mubr.bf16.mxu0 %v4296_v48 }
 0x1a4   :  { %2119 = vmatpush1.bf16.msra.mxu0 %v3636_v7  ;;  %2205 = vmatpush1.bf16.msra.mxu1 %v3639_v50  ;;  %v3719_v7 = vld [vmem:[#allocation8 + $0x40c] ss:$16 sps:$4 sm:$0xff]   ;;  %v413_v50 = vadd.f32 %v4282_v28, %v158_v45  ;;  %v3846_v45 = vld [vmem:[#allocation10 + $0xa0] ss:$8 sps:$4 sm:$0xff]  }
 0x1a5   :  { %2120 = vmatprep.subr.bf16.mxu0 %v3644_v51  ;;  %2206 = vmatprep.subr.bf16.mxu1 %v3647_v52  ;;  %v3714_v51 = vld [vmem:[#allocation8 + $0x7c0] ss:$16 sps:$4 sm:$0xff]   ;;  %v3717_v52 = vld [vmem:[#allocation8 + $0x408] ss:$16 sps:$4 sm:$0xff]   ;;  %v3818_v28 = vld [vmem:[#allocation10 + $0x4] ss:$8 sps:$4 sm:$0xff]  }
 0x1a8   :  { %2121 = vmatpush1.bf16.msra.mxu0 %v3642_v53  ;;  %2207 = vmatpush1.bf16.msra.mxu1 %v3645_v54  ;;  %v3722_v53 = vld [vmem:[#allocation8 + $0x7e4] ss:$16 sps:$4 sm:$0xff]   ;;  %v3725_v54 = vld [vmem:[#allocation8 + $0x42c] ss:$16 sps:$4 sm:$0xff]  }
 0x1a9   :  { %2122 = vmatprep.subr.bf16.mxu0 %v3650_v55  ;;  %2208 = vmatprep.subr.bf16.mxu1 %v3653_v56  ;;  %v425_v55 = vmax.f32 %v413_v50, 0.0  ;;  %v3723_v56 = vld [vmem:[#allocation8 + $0x428] ss:$16 sps:$4 sm:$0xff]   ;;  %v3764_v50 = vld [vmem:[#allocation8 + $0x5cc] ss:$16 sps:$4 sm:$0xff]  }
 0x1ac   :  { %2123 = vmatpush1.bf16.msra.mxu0 %v3648_v58  ;;  %2209 = vmatpush1.bf16.msra.mxu1 %v3651_v59  ;;  %v3728_v58 = vld [vmem:[#allocation8 + $0x44c] ss:$16 sps:$4 sm:$0xff]   ;;  %v4305_v59 = vpack.c.bf16 %v425_v55, %v425_v55 }
 0x1ad   :  { %2124 = vmatprep.subr.bf16.mxu0 %v3656_v60  ;;  %2210 = vmatprep.subr.bf16.mxu1 %v3659_v61  ;;  %v3726_v60 = vld [vmem:[#allocation8 + $0x448] ss:$16 sps:$4 sm:$0xff]   ;;  %v3857_v55 = vld [vmem:[#allocation10 + $0xd4] ss:$8 sps:$4 sm:$0xff]  }
 0x1ae   :  { %v3816_v61 = vld [vmem:[#allocation10] ss:$8 sps:$4 sm:$0xff]  }
 0x1b0   :  { %2125 = vmatpush1.bf16.msra.mxu0 %v3654_v62  ;;  %2211 = vmatpush1.bf16.msra.mxu1 %v3657_v63  ;;  %v3731_v62 = vld [vmem:[#allocation8 + $0x46c] ss:$16 sps:$4 sm:$0xff]   ;;  %v3729_v63 = vld [vmem:[#allocation8 + $0x468] ss:$16 sps:$4 sm:$0xff]  }
 0x1b1   :  { %2126 = vmatprep.subr.bf16.mxu0 %v3662_v0  ;;  %2212 = vmatprep.subr.bf16.mxu1 %v3665_v1  ;;  %v3734_v0 = vld [vmem:[#allocation8 + $0x48c] ss:$16 sps:$4 sm:$0xff]  }
 0x1b2   :  { %v3824_v1 = vld [vmem:[#allocation10 + $0x24] ss:$8 sps:$4 sm:$0xff]  }
 0x1b4   :  { %2127 = vmatpush1.bf16.msra.mxu0 %v3660_v2  ;;  %2213 = vmatpush1.bf16.msra.mxu1 %v3663_v3  ;;  %v3732_v2 = vld [vmem:[#allocation8 + $0x488] ss:$16 sps:$4 sm:$0xff]  }
 0x1b5   :  { %2128 = vmatprep.subr.bf16.mxu0 %v3668_v4  ;;  %2214 = vmatprep.subr.bf16.mxu1 %v3671_v5  ;;  %v3822_v3 = vld [vmem:[#allocation10 + $0x20] ss:$8 sps:$4 sm:$0xff]   ;;  %v3737_v4 = vld [vmem:[#allocation8 + $0x4ac] ss:$16 sps:$4 sm:$0xff]  }
 0x1b6   :  { %v3827_v5 = vld [vmem:[#allocation10 + $0x34] ss:$8 sps:$4 sm:$0xff]  }
 0x1b8   :  { %2129 = vmatpush1.bf16.msra.mxu0 %v3666_v8  ;;  %2215 = vmatpush1.bf16.msra.mxu1 %v3669_v9  ;;  %v3735_v8 = vld [vmem:[#allocation8 + $0x4a8] ss:$16 sps:$4 sm:$0xff]  }
 0x1b9   :  { %2130 = vmatprep.subr.bf16.mxu0 %v3674_v10  ;;  %2216 = vmatprep.subr.bf16.mxu1 %v3677_v11  ;;  %v3825_v9 = vld [vmem:[#allocation10 + $0x30] ss:$8 sps:$4 sm:$0xff]   ;;  %v3740_v10 = vld [vmem:[#allocation8 + $0x4cc] ss:$16 sps:$4 sm:$0xff]  }
 0x1ba   :  { %v3830_v11 = vld [vmem:[#allocation10 + $0x44] ss:$8 sps:$4 sm:$0xff]  }
 0x1bc   :  { %2131 = vmatpush1.bf16.msra.mxu0 %v3672_v12  ;;  %2217 = vmatpush1.bf16.msra.mxu1 %v3675_v14  ;;  %v3738_v12 = vld [vmem:[#allocation8 + $0x4c8] ss:$16 sps:$4 sm:$0xff]  }
 0x1bd   :  { %2132 = vmatprep.subr.bf16.mxu0 %v3680_v15  ;;  %2218 = vmatprep.subr.bf16.mxu1 %v3683_v16  ;;  %v3828_v14 = vld [vmem:[#allocation10 + $0x40] ss:$8 sps:$4 sm:$0xff]   ;;  %v3743_v15 = vld [vmem:[#allocation8 + $0x4ec] ss:$16 sps:$4 sm:$0xff]  }
 0x1be   :  { %v3833_v16 = vld [vmem:[#allocation10 + $0x54] ss:$8 sps:$4 sm:$0xff]  }
 0x1c0   :  { %2133 = vmatpush1.bf16.msra.mxu0 %v3678_v17  ;;  %2219 = vmatpush1.bf16.msra.mxu1 %v3681_v18  ;;  %v3741_v17 = vld [vmem:[#allocation8 + $0x4e8] ss:$16 sps:$4 sm:$0xff]  }
 0x1c1   :  { %2134 = vmatprep.subr.bf16.mxu0 %v3686_v19  ;;  %2220 = vmatprep.subr.bf16.mxu1 %v3689_v20  ;;  %v3831_v18 = vld [vmem:[#allocation10 + $0x50] ss:$8 sps:$4 sm:$0xff]   ;;  %v3746_v19 = vld [vmem:[#allocation8 + $0x50c] ss:$16 sps:$4 sm:$0xff]  }
 0x1c2   :  { %v3836_v20 = vld [vmem:[#allocation10 + $0x64] ss:$8 sps:$4 sm:$0xff]  }
 0x1c4   :  { %2135 = vmatpush1.bf16.msra.mxu0 %v3684_v21  ;;  %2221 = vmatpush1.bf16.msra.mxu1 %v3687_v22  ;;  %v3744_v21 = vld [vmem:[#allocation8 + $0x508] ss:$16 sps:$4 sm:$0xff]  }
 0x1c5   :  { %2136 = vmatprep.subr.bf16.mxu0 %v3692_v23  ;;  %2222 = vmatprep.subr.bf16.mxu1 %v3695_v24  ;;  %v3834_v22 = vld [vmem:[#allocation10 + $0x60] ss:$8 sps:$4 sm:$0xff]   ;;  %v3749_v23 = vld [vmem:[#allocation8 + $0x52c] ss:$16 sps:$4 sm:$0xff]  }
 0x1c6   :  { %v3839_v24 = vld [vmem:[#allocation10 + $0x74] ss:$8 sps:$4 sm:$0xff]  }
 0x1c8   :  { %2137 = vmatpush1.bf16.msra.mxu0 %v3690_v26  ;;  %2223 = vmatpush1.bf16.msra.mxu1 %v3693_v27  ;;  %v3747_v26 = vld [vmem:[#allocation8 + $0x528] ss:$16 sps:$4 sm:$0xff]  }
 0x1c9   :  { %2138 = vmatprep.subr.bf16.mxu0 %v3698_v30  ;;  %2224 = vmatprep.subr.bf16.mxu1 %v3701_v31  ;;  %v3837_v27 = vld [vmem:[#allocation10 + $0x70] ss:$8 sps:$4 sm:$0xff]   ;;  %v3752_v30 = vld [vmem:[#allocation8 + $0x54c] ss:$16 sps:$4 sm:$0xff]  }
 0x1ca   :  { %v3842_v31 = vld [vmem:[#allocation10 + $0x84] ss:$8 sps:$4 sm:$0xff]  }
 0x1cc   :  { %2139 = vmatpush1.bf16.msra.mxu0 %v3696_v32  ;;  %2225 = vmatpush1.bf16.msra.mxu1 %v3699_v33  ;;  %v3750_v32 = vld [vmem:[#allocation8 + $0x548] ss:$16 sps:$4 sm:$0xff]  }
 0x1cd   :  { %2140 = vmatprep.subr.bf16.mxu0 %v3704_v34  ;;  %2226 = vmatprep.subr.bf16.mxu1 %v3707_v35  ;;  %v3840_v33 = vld [vmem:[#allocation10 + $0x80] ss:$8 sps:$4 sm:$0xff]   ;;  %v3755_v34 = vld [vmem:[#allocation8 + $0x56c] ss:$16 sps:$4 sm:$0xff]  }
 0x1ce   :  { %v3845_v35 = vld [vmem:[#allocation10 + $0x94] ss:$8 sps:$4 sm:$0xff]  }
 0x1d0   :  { %2141 = vmatpush1.bf16.msra.mxu0 %v3702_v41  ;;  %2227 = vmatpush1.bf16.msra.mxu1 %v3705_v13  ;;  %v3843_v41 = vld [vmem:[#allocation10 + $0x90] ss:$8 sps:$4 sm:$0xff]   ;;  %v3758_v13 = vld [vmem:[#allocation8 + $0x58c] ss:$16 sps:$4 sm:$0xff]  }
 0x1d1   :  { %2142 = vmatprep.subr.bf16.mxu0 %v3710_v42  ;;  %2228 = vmatprep.subr.bf16.mxu1 %v3713_v43  ;;  %v3848_v42 = vld [vmem:[#allocation10 + $0xa4] ss:$8 sps:$4 sm:$0xff]   ;;  %v3756_v43 = vld [vmem:[#allocation8 + $0x588] ss:$16 sps:$4 sm:$0xff]  }
 0x1d4   :  { %2143 = vmatpush1.bf16.msra.mxu0 %v3708_v29  ;;  %2229 = vmatpush1.bf16.msra.mxu1 %v3711_v57  ;;  %v3761_v29 = vld [vmem:[#allocation8 + $0x5ac] ss:$16 sps:$4 sm:$0xff]  }
 0x1d5   :  { %2144 = vmatprep.subr.bf16.mxu0 %v3716_v47  ;;  %2239 = vmatprep.subr.bf16.mxu1 %v3719_v7  ;;  %v3851_v57 = vld [vmem:[#allocation10 + $0xb4] ss:$8 sps:$4 sm:$0xff]   ;;  %v3759_v47 = vld [vmem:[#allocation8 + $0x5a8] ss:$16 sps:$4 sm:$0xff]  }
 0x1d6   :  { %v3849_v7 = vld [vmem:[#allocation10 + $0xb0] ss:$8 sps:$4 sm:$0xff]  }
 0x1d7   :  { %2231 = vmatmul.mubr.bf16.vlgmr.msra.gmra.mrb[4].mxu1 %v4270_v6  ;;  %v3821_v6 = vld [vmem:[#allocation10 + $0x14] ss:$8 sps:$4 sm:$0xff]  }
 0x1d8   :  { %2145 = vmatpush1.bf16.msra.mxu0 %v3714_v51  ;;  %2240 = vmatpush1.bf16.msra.mxu1 %v3717_v52  ;;  %v3854_v51 = vld [vmem:[#allocation10 + $0xc4] ss:$8 sps:$4 sm:$0xff]   ;;  %v3762_v52 = vld [vmem:[#allocation8 + $0x5c8] ss:$16 sps:$4 sm:$0xff]  }
 0x1d9   :  { %2271 = vmatprep.mubr.bf16.mxu1 %v4279_v25  ;;  %2146 = vmatprep.subr.bf16.mxu0 %v3722_v53  ;;  %v3819_v25 = vld [vmem:[#allocation10 + $0x10] ss:$8 sps:$4 sm:$0xff]   ;;  %v3852_v53 = vld [vmem:[#allocation10 + $0xc0] ss:$8 sps:$4 sm:$0xff]  }
 0x1da   :  { %2241 = vmatprep.subr.bf16.mxu1 %v3725_v54  ;;  %v3767_v54 = vld [vmem:[#allocation8 + $0x5ec] ss:$16 sps:$4 sm:$0xff]  }
 0x1dc   :  { %2147 = vmatpush1.bf16.msra.mxu0 %v3720_v39  ;;  %2242 = vmatpush1.bf16.msra.mxu1 %v3723_v56  ;;  %v3765_v39 = vld [vmem:[#allocation8 + $0x5e8] ss:$16 sps:$4 sm:$0xff]  }
 0x1dd   :  { %2243 = vmatprep.subr.bf16.mxu1 %v3728_v58  ;;  %2725 = vmatprep.subr.bf16.mxu0 %v3818_v28  ;;  %v3855_v56 = vld [vmem:[#allocation10 + $0xd0] ss:$8 sps:$4 sm:$0xff]   ;;  %v3770_v58 = vld [vmem:[#allocation8 + $0x60c] ss:$16 sps:$4 sm:$0xff]  }
 0x1de   :  { %v3768_v28 = vld [vmem:[#allocation8 + $0x608] ss:$16 sps:$4 sm:$0xff]  }
 0x1df   :  { %2149 = vmatmul.mubr.bf16.vlgmr.msra.gmra.mrb[16].mxu0 %v4305_v59 }
 0x1e0   :  { %2244 = vmatpush1.bf16.msra.mxu1 %v3726_v60  ;;  %2726 = vmatpush1.bf16.msra.mxu0 %v3816_v61  ;;  %v3773_v60 = vld [vmem:[#allocation8 + $0x62c] ss:$16 sps:$4 sm:$0xff]   ;;  %v3771_v61 = vld [vmem:[#allocation8 + $0x628] ss:$16 sps:$4 sm:$0xff]  }
 0x1e1   :  { %2245 = vmatprep.subr.bf16.mxu1 %v3731_v62  ;;  %2727 = vmatprep.subr.bf16.mxu0 %v3821_v6  ;;  %v3776_v62 = vld [vmem:[#allocation8 + $0x64c] ss:$16 sps:$4 sm:$0xff]   ;;  %v3774_v6 = vld [vmem:[#allocation8 + $0x648] ss:$16 sps:$4 sm:$0xff]  }
 0x1e4   :  { %2246 = vmatpush1.bf16.msra.mxu1 %v3729_v63  ;;  %2728 = vmatpush1.bf16.msra.mxu0 %v3819_v25  ;;  %v3779_v63 = vld [vmem:[#allocation8 + $0x66c] ss:$16 sps:$4 sm:$0xff]   ;;  %v3777_v25 = vld [vmem:[#allocation8 + $0x668] ss:$16 sps:$4 sm:$0xff]  }
 0x1e5   :  { %2247 = vmatprep.subr.bf16.mxu1 %v3734_v0  ;;  %2729 = vmatprep.subr.bf16.mxu0 %v3824_v1  ;;  %v3782_v0 = vld [vmem:[#allocation8 + $0x68c] ss:$16 sps:$4 sm:$0xff]   ;;  %v3780_v1 = vld [vmem:[#allocation8 + $0x688] ss:$16 sps:$4 sm:$0xff]  }
 0x1e8   :  { %2248 = vmatpush1.bf16.msra.mxu1 %v3732_v2  ;;  %2730 = vmatpush1.bf16.msra.mxu0 %v3822_v3  ;;  %v3785_v2 = vld [vmem:[#allocation8 + $0x6ac] ss:$16 sps:$4 sm:$0xff]  }
 0x1e9   :  { %2249 = vmatprep.subr.bf16.mxu1 %v3737_v4  ;;  %2731 = vmatprep.subr.bf16.mxu0 %v3827_v5  ;;  %v3788_v3 = vld [vmem:[#allocation8 + $0x6cc] ss:$16 sps:$4 sm:$0xff]  }
 0x1ec   :  { %2250 = vmatpush1.bf16.msra.mxu1 %v3735_v8  ;;  %2732 = vmatpush1.bf16.msra.mxu0 %v3825_v9  ;;  %v3786_v8 = vld [vmem:[#allocation8 + $0x6c8] ss:$16 sps:$4 sm:$0xff]  }
 0x1ed   :  { %2251 = vmatprep.subr.bf16.mxu1 %v3740_v10  ;;  %2733 = vmatprep.subr.bf16.mxu0 %v3830_v11  ;;  %v3791_v10 = vld [vmem:[#allocation8 + $0x6ec] ss:$16 sps:$4 sm:$0xff]   ;;  %v3789_v11 = vld [vmem:[#allocation8 + $0x6e8] ss:$16 sps:$4 sm:$0xff]  }
 0x1f0   :  { %2252 = vmatpush1.bf16.msra.mxu1 %v3738_v12  ;;  %2734 = vmatpush1.bf16.msra.mxu0 %v3828_v14  ;;  %v3794_v12 = vld [vmem:[#allocation8 + $0x70c] ss:$16 sps:$4 sm:$0xff]  }
 0x1f1   :  { %2253 = vmatprep.subr.bf16.mxu1 %v3743_v15  ;;  %2735 = vmatprep.subr.bf16.mxu0 %v3833_v16  ;;  %v3860_v14 = vld [vmem:[#allocation10 + $0xe4] ss:$8 sps:$4 sm:$0xff]   ;;  %v3858_v15 = vld [vmem:[#allocation10 + $0xe0] ss:$8 sps:$4 sm:$0xff]  }
 0x1f2   :  { %v3792_v16 = vld [vmem:[#allocation8 + $0x708] ss:$16 sps:$4 sm:$0xff]  }
 0x1f4   :  { %2254 = vmatpush1.bf16.msra.mxu1 %v3741_v17  ;;  %2736 = vmatpush1.bf16.msra.mxu0 %v3831_v18  ;;  %v3797_v17 = vld [vmem:[#allocation8 + $0x72c] ss:$16 sps:$4 sm:$0xff]  }
 0x1f5   :  { %2255 = vmatprep.subr.bf16.mxu1 %v3746_v19  ;;  %2737 = vmatprep.subr.bf16.mxu0 %v3836_v20  ;;  %v3863_v18 = vld [vmem:[#allocation10 + $0xf4] ss:$8 sps:$4 sm:$0xff]   ;;  %v3861_v19 = vld [vmem:[#allocation10 + $0xf0] ss:$8 sps:$4 sm:$0xff]  }
 0x1f6   :  { %v3795_v20 = vld [vmem:[#allocation8 + $0x728] ss:$16 sps:$4 sm:$0xff]  }
 0x1f8   :  { %2256 = vmatpush1.bf16.msra.mxu1 %v3744_v21  ;;  %2738 = vmatpush1.bf16.msra.mxu0 %v3834_v22  ;;  %v3800_v21 = vld [vmem:[#allocation8 + $0x74c] ss:$16 sps:$4 sm:$0xff]  }
 0x1f9   :  { %2257 = vmatprep.subr.bf16.mxu1 %v3749_v23  ;;  %2739 = vmatprep.subr.bf16.mxu0 %v3839_v24  ;;  %v3866_v22 = vld [vmem:[#allocation10 + $0x104] ss:$8 sps:$4 sm:$0xff]   ;;  %v3798_v23 = vld [vmem:[#allocation8 + $0x748] ss:$16 sps:$4 sm:$0xff]  }
 0x1fa   :  { %v3803_v24 = vld [vmem:[#allocation8 + $0x76c] ss:$16 sps:$4 sm:$0xff]  }
 0x1fc   :  { %2258 = vmatpush1.bf16.msra.mxu1 %v3747_v26  ;;  %2740 = vmatpush1.bf16.msra.mxu0 %v3837_v27  ;;  %v3801_v26 = vld [vmem:[#allocation8 + $0x768] ss:$16 sps:$4 sm:$0xff]   ;;  %v3806_v27 = vld [vmem:[#allocation8 + $0x78c] ss:$16 sps:$4 sm:$0xff]  }
 0x1fd   :  { %2259 = vmatprep.subr.bf16.mxu1 %v3752_v30  ;;  %2741 = vmatprep.subr.bf16.mxu0 %v3842_v31  ;;  %v3804_v30 = vld [vmem:[#allocation8 + $0x788] ss:$16 sps:$4 sm:$0xff]   ;;  %v3809_v31 = vld [vmem:[#allocation8 + $0x7ac] ss:$16 sps:$4 sm:$0xff]  }
 0x200   :  { %2260 = vmatpush1.bf16.msra.mxu1 %v3750_v32  ;;  %2742 = vmatpush1.bf16.msra.mxu0 %v3840_v33  ;;  %v3807_v32 = vld [vmem:[#allocation8 + $0x7a8] ss:$16 sps:$4 sm:$0xff]   ;;  %v3812_v33 = vld [vmem:[#allocation8 + $0x7cc] ss:$16 sps:$4 sm:$0xff]  }
 0x201   :  { %2261 = vmatprep.subr.bf16.mxu1 %v3755_v34  ;;  %2743 = vmatprep.subr.bf16.mxu0 %v3845_v35  ;;  %v3810_v34 = vld [vmem:[#allocation8 + $0x7c8] ss:$16 sps:$4 sm:$0xff]   ;;  %v3815_v35 = vld [vmem:[#allocation8 + $0x7ec] ss:$16 sps:$4 sm:$0xff]  }
 0x204   :  { %2262 = vmatpush1.bf16.msra.mxu1 %v3753_v36  ;;  %2744 = vmatpush1.bf16.msra.mxu0 %v3843_v41  ;;  %v3813_v36 = vld [vmem:[#allocation8 + $0x7e8] ss:$16 sps:$4 sm:$0xff]   ;;  %v4314_v41 = vld [vmem:[%s4350_s4] sm:$0xf] }
 0x205   :  { %2263 = vmatprep.subr.bf16.mxu1 %v3758_v13  ;;  %2745 = vmatprep.subr.bf16.mxu0 %v3848_v42  ;;  %v696_v13 = vrot.slane %v4314_v41, %v4247_v38  ;;  %v700_v42 = vrot.slane %v4314_v41, %v4252_v40 }
 0x208   :  { %2264 = vmatpush1.bf16.msra.mxu1 %v3756_v43  ;;  %2746 = vmatpush1.bf16.msra.mxu0 %v3846_v45 }
 0x209   :  { %2265 = vmatprep.subr.bf16.mxu1 %v3761_v29  ;;  %2747 = vmatprep.subr.bf16.mxu0 %v3851_v57 }
 0x20c   :  { %2266 = vmatpush1.bf16.msra.mxu1 %v3759_v47  ;;  %2748 = vmatpush1.bf16.msra.mxu0 %v3849_v7  ;;  %v3912_v7 = vld [vmem:[#allocation11 + $0x40] sm:$0xff]  }
 0x20d   :  { %2267 = vmatprep.subr.bf16.mxu1 %v3764_v50  ;;  %2749 = vmatprep.subr.bf16.mxu0 %v3854_v51  ;;  %v3913_v50 = vld [vmem:[#allocation11] sm:$0xff]   ;;  %v3914_v51 = vld [vmem:[#allocation11 + $0x48] sm:$0xff]  }
 0x210   :  { %2268 = vmatpush1.bf16.msra.mxu1 %v3762_v52  ;;  %2750 = vmatpush1.bf16.msra.mxu0 %v3852_v53 }
 0x211   :  { %2269 = vmatprep.subr.bf16.mxu1 %v3767_v54  ;;  %2751 = vmatprep.subr.bf16.mxu0 %v3857_v55 }
 0x214   :  { %2270 = vmatpush1.bf16.msra.mxu1 %v3765_v39  ;;  %2752 = vmatpush1.bf16.msra.mxu0 %v3855_v56  ;;  %v3915_v39 = vld [vmem:[#allocation11 + $0x8] sm:$0xff]   ;;  %v3916_v56 = vld [vmem:[#allocation11 + $0x50] sm:$0xff]  }
 0x215   :  { %2280 = vmatprep.subr.bf16.mxu1 %v3770_v58  ;;  %2753 = vmatprep.subr.bf16.mxu0 %v3860_v14  ;;  %v3882_v14 = vld [vmem:[#allocation10 + $0x160] ss:$8 sps:$4 sm:$0xff]  }
 0x217   :  { %2272 = vmatmul.mubr.bf16.vlgmr.msra.gmra.mrb[4].mxu1 %v4294_v44  ;;  %v3783_v44 = vld [vmem:[#allocation8 + $0x6a8] ss:$16 sps:$4 sm:$0xff]  }
 0x218   :  { %2281 = vmatpush1.bf16.msra.mxu1 %v3768_v28  ;;  %2312 = vmatprep.mubr.bf16.mxu1 %v4296_v48  ;;  %v3864_v28 = vld [vmem:[#allocation10 + $0x100] ss:$8 sps:$4 sm:$0xff]  }
 0x219   :  { %2282 = vmatprep.subr.bf16.mxu1 %v3773_v60  ;;  %2754 = vmatpush1.bf16.msra.mxu0 %v3858_v15  ;;  %v3887_v15 = vld [vmem:[#allocation10 + $0x174] ss:$8 sps:$4 sm:$0xff]  }
 0x21a   :  { %2755 = vmatprep.subr.bf16.mxu0 %v3863_v18  ;;  %v3888_v18 = vld [vmem:[#allocation10 + $0x180] ss:$8 sps:$4 sm:$0xff]  }
 0x21c   :  { %2283 = vmatpush1.bf16.msra.mxu1 %v3771_v61  ;;  %v3869_v61 = vld [vmem:[#allocation10 + $0x114] ss:$8 sps:$4 sm:$0xff]  }
 0x21d   :  { %2284 = vmatprep.subr.bf16.mxu1 %v3776_v62  ;;  %2756 = vmatpush1.bf16.msra.mxu0 %v3861_v19  ;;  %v3917_v62 = vld [vmem:[#allocation11 + $0x10] sm:$0xff]  }
 0x21e   :  { %2766 = vmatprep.subr.bf16.mxu0 %v3866_v22  ;;  %v3893_v19 = vld [vmem:[#allocation10 + $0x194] ss:$8 sps:$4 sm:$0xff]   ;;  %v3894_v22 = vld [vmem:[#allocation10 + $0x1a0] ss:$8 sps:$4 sm:$0xff]  }
 0x220   :  { %2285 = vmatpush1.bf16.msra.mxu1 %v3774_v6  ;;  %v3918_v6 = vld [vmem:[#allocation11 + $0x58] sm:$0xff]  }
 0x221   :  { %2286 = vmatprep.subr.bf16.mxu1 %v3779_v63  ;;  %v3867_v63 = vld [vmem:[#allocation10 + $0x110] ss:$8 sps:$4 sm:$0xff]  }
 0x224   :  { %2287 = vmatpush1.bf16.msra.mxu1 %v3777_v25  ;;  %v3872_v25 = vld [vmem:[#allocation10 + $0x124] ss:$8 sps:$4 sm:$0xff]  }
 0x225   :  { %2288 = vmatprep.subr.bf16.mxu1 %v3782_v0  ;;  %v3919_v0 = vld [vmem:[#allocation11 + $0x18] sm:$0xff]  }
 0x228   :  { %2289 = vmatpush1.bf16.msra.mxu1 %v3780_v1  ;;  %v3920_v1 = vld [vmem:[#allocation11 + $0x60] sm:$0xff]  }
 0x229   :  { %2290 = vmatprep.subr.bf16.mxu1 %v3785_v2  ;;  %v3870_v2 = vld [vmem:[#allocation10 + $0x120] ss:$8 sps:$4 sm:$0xff]  }
 0x22a   :  { %v2027_v48 = vpop.f32.mrb[0].mxu1 }
 0x22b   :  { %v2029_v4 = vpop.f32.mrb[1].mxu1  ;;  %v2028_v43 = vadd.f32 %v2027_v48, %v696_v13  ;;  %v3922_v48 = vld [vmem:[#allocation11 + $0x68] sm:$0xff]   ;;  %v708_v13 = vrot.slane %v4314_v41, %v145_v49  ;;  %v2393_v49 = vld [vmem:[%s4352_s6] sm:$0x3]  ;;  %s4107_s6 = smov [#allocation13]  }
 0x22c   :  { %2291 = vmatpush1.bf16.msra.mxu1 %v3783_v44  ;;  %v2031_v5 = vpop.f32.mrb[2].mxu1  ;;  %v2030_v45 = vadd.f32 %v2029_v4, %v700_v42  ;;  %v3875_v44 = vld [vmem:[#allocation10 + $0x134] ss:$8 sps:$4 sm:$0xff]   ;;  %v3873_v4 = vld [vmem:[#allocation10 + $0x130] ss:$8 sps:$4 sm:$0xff]   ;;  %s2993_s22 = sshll.u32 %s4107_s6, 4  ;;  %s2994_s22 = int_to_ptr.vmem [resolvable:$true] %s2993_s22 }
 0x22d   :  { %v2032_v9 = vpop.f32.mrb[3].mxu1  ;;  %2292 = vmatprep.subr.bf16.mxu1 %v3788_v3  ;;  %v3921_v3 = vld [vmem:[#allocation11 + $0x20] sm:$0xff]   ;;  %s4060_s23 = scalar_lea.vmem %s2994_s22, 128  ;;  %p4065_p7 = scmp.lt.s32.totalorder %s2994_s22, %s2994_s22 }
 0x22e   :  { %v3878_v5 = vld [vmem:[#allocation10 + $0x144] ss:$8 sps:$4 sm:$0xff]   ;;  %v3876_v9 = vld [vmem:[#allocation10 + $0x140] ss:$8 sps:$4 sm:$0xff]   ;;  %p4061_p6 = scmp.ne.s32.totalorder %s2994_s22, %s4060_s23  ;;  %p4066_p8 = scmp.lt.s32.totalorder %s4060_s23, %s4060_s23 }
 0x230   :  { %2293 = vmatpush1.bf16.msra.mxu1 %v3786_v8  ;;  %v3923_v8 = vld [vmem:[#allocation11 + $0x28] sm:$0xff]   ;;  %p4067_p9 = por %p4066_p8, %p4065_p7 }
 0x231   :  { %2294 = vmatprep.subr.bf16.mxu1 %v3791_v10  ;;  %v3881_v10 = vld [vmem:[#allocation10 + $0x154] ss:$8 sps:$4 sm:$0xff]  }
 0x232   :  { %p4068_p10 = pnand %p4067_p9, %p4061_p6 }
 0x234   :  { %2295 = vmatpush1.bf16.msra.mxu1 %v3789_v11  ;;  %v3879_v11 = vld [vmem:[#allocation10 + $0x150] ss:$8 sps:$4 sm:$0xff]  }
 0x235   :  { %2296 = vmatprep.subr.bf16.mxu1 %v3794_v12  ;;  %v3884_v12 = vld [vmem:[#allocation10 + $0x164] ss:$8 sps:$4 sm:$0xff]  }
 0x238   :  { %2297 = vmatpush1.bf16.msra.mxu1 %v3792_v16  ;;  %v3885_v16 = vld [vmem:[#allocation10 + $0x170] ss:$8 sps:$4 sm:$0xff]  }
 0x239   :  { %2298 = vmatprep.subr.bf16.mxu1 %v3797_v17  ;;  %v3890_v17 = vld [vmem:[#allocation10 + $0x184] ss:$8 sps:$4 sm:$0xff]  }
 0x23c   :  { %2299 = vmatpush1.bf16.msra.mxu1 %v3795_v20  ;;  %v3891_v20 = vld [vmem:[#allocation10 + $0x190] ss:$8 sps:$4 sm:$0xff]  }
 0x23d   :  { %2300 = vmatprep.subr.bf16.mxu1 %v3800_v21  ;;  %v3896_v21 = vld [vmem:[#allocation10 + $0x1a4] ss:$8 sps:$4 sm:$0xff]  }
 0x240   :  { %2301 = vmatpush1.bf16.msra.mxu1 %v3798_v23  ;;  %v3899_v23 = vld [vmem:[#allocation10 + $0x1b4] ss:$8 sps:$4 sm:$0xff]  }
 0x241   :  { %2302 = vmatprep.subr.bf16.mxu1 %v3803_v24  ;;  %v3897_v24 = vld [vmem:[#allocation10 + $0x1b0] ss:$8 sps:$4 sm:$0xff]  }
 0x244   :  { %2303 = vmatpush1.bf16.msra.mxu1 %v3801_v26  ;;  %v3902_v26 = vld [vmem:[#allocation10 + $0x1c4] ss:$8 sps:$4 sm:$0xff]  }
 0x245   :  { %2304 = vmatprep.subr.bf16.mxu1 %v3806_v27  ;;  %v3900_v27 = vld [vmem:[#allocation10 + $0x1c0] ss:$8 sps:$4 sm:$0xff]  }
 0x248   :  { %2305 = vmatpush1.bf16.msra.mxu1 %v3804_v30  ;;  %v3905_v30 = vld [vmem:[#allocation10 + $0x1d4] ss:$8 sps:$4 sm:$0xff]  }
 0x249   :  { %2306 = vmatprep.subr.bf16.mxu1 %v3809_v31  ;;  %v3903_v31 = vld [vmem:[#allocation10 + $0x1d0] ss:$8 sps:$4 sm:$0xff]  }
 0x24c   :  { %2307 = vmatpush1.bf16.msra.mxu1 %v3807_v32  ;;  %v3908_v32 = vld [vmem:[#allocation10 + $0x1e4] ss:$8 sps:$4 sm:$0xff]  }
 0x24d   :  { %2308 = vmatprep.subr.bf16.mxu1 %v3812_v33  ;;  %v3906_v33 = vld [vmem:[#allocation10 + $0x1e0] ss:$8 sps:$4 sm:$0xff]  }
 0x250   :  { %2309 = vmatpush1.bf16.msra.mxu1 %v3810_v34  ;;  %v3911_v34 = vld [vmem:[#allocation10 + $0x1f4] ss:$8 sps:$4 sm:$0xff]  }
 0x251   :  { %2310 = vmatprep.subr.bf16.mxu1 %v3815_v35  ;;  %v3909_v35 = vld [vmem:[#allocation10 + $0x1f0] ss:$8 sps:$4 sm:$0xff]  }
 0x254   :  { %2311 = vmatpush1.bf16.msra.mxu1 %v3813_v36  ;;  %v704_v36 = vrot.slane %v4314_v41, %v141_v46  ;;  %v3926_v46 = vld [vmem:[#allocation11 + $0x78] sm:$0xff]   ;;  %v2398_v41 = vrot.slane %v2393_v49, %v4247_v38 }
 0x255   :  { %3362 = vmatprep.subr.bf16.mxu1 %v3912_v7 }
 0x257   :  { %2313 = vmatmul.mubr.bf16.vlgmr.msra.gmra.mrb[4].mxu1 %v4305_v59 }
 0x258   :  { %3363 = vmatpush3.bf16.msra.mxu1 %v3913_v50 }
 0x259   :  { %3364 = vmatprep.subr.bf16.mxu1 %v3914_v51 }
 0x25c   :  { %3365 = vmatpush3.bf16.msra.mxu1 %v3915_v39 }
 0x25d   :  { %3366 = vmatprep.subr.bf16.mxu1 %v3916_v56 }
 0x260   :  { %3367 = vmatpush3.bf16.msra.mxu1 %v3917_v62 }
 0x261   :  { %3368 = vmatprep.subr.bf16.mxu1 %v3918_v6 }
 0x264   :  { %3369 = vmatpush3.bf16.msra.mxu1 %v3919_v0  ;;  %v3345_v0 = vld [vmem:[%s4354_s8] ss:$0 sm:$0xff] }
 0x265   :  { %3370 = vmatprep.subr.bf16.mxu1 %v3920_v1 }
 0x268   :  { %3371 = vmatpush3.bf16.msra.mxu1 %v3921_v3 }
 0x269   :  { %3372 = vmatprep.subr.bf16.mxu1 %v3922_v48 }
 0x26c   :  { %3373 = vmatpush3.bf16.msra.mxu1 %v3923_v8 }
 0x2b2   :  { %v2150_v29 = vpop.f32.mrb[16].mxu0 }
 0x2b3   :  { %v3385_v57 = vadd.f32 %v2150_v29, %v2028_v43  ;;  %v2152_v47 = vpop.f32.mrb[17].mxu0 }
 0x2b4   :  { %v3387_v59 = vadd.f32 %v2152_v47, %v2030_v45  ;;  %v2154_v52 = vpop.f32.mrb[18].mxu0 }
 0x2b5   :  { %v2321_v53 = vmax.f32 %v3385_v57, 0.0  ;;  %v2155_v54 = vpop.f32.mrb[19].mxu0  ;;  %v3924_v52 = vld [vmem:[#allocation11 + $0x70] sm:$0xff]  }
 0x2b6   :  { %v2322_v55 = vmax.f32 %v3387_v59, 0.0  ;;  %3374 = vmatprep.subr.bf16.mxu1 %v3924_v52  ;;  %v2402_v54 = vrot.slane %v2393_v49, %v4252_v40 }
 0x2b7   :  { %v2325_v60 = vpack.c.bf16 %v2321_v53, %v2321_v53  ;;  %v3925_v53 = vld [vmem:[#allocation11 + $0x30] sm:$0xff]  }
 0x2b8   :  { %v2326_v58 = vpack.c.bf16 %v2322_v55, %v2322_v55  ;;  %3375 = vmatpush3.bf16.msra.mxu1 %v3925_v53 }
 0x2b9   :  { %3376 = vmatprep.subr.bf16.mxu1 %v3926_v46 }
 0x2ba   :  { %2757 = vmatprep.mubr.bf16.mxu0 %v2326_v58 }
 0x2bb   :  { %2758 = vmatmul.mubr.bf16.vlgmr.msra.gmra.mrb[20].mxu0 %v2325_v60 }
 0x2bc   :  { %2767 = vmatpush1.bf16.msra.mxu0 %v3864_v28  ;;  %3377 = vmatpush3.bf16.msra.mxu1 %v3927_v37 }
 0x2bd   :  { %2768 = vmatprep.subr.bf16.mxu0 %v3869_v61 }
 0x2c0   :  { %2769 = vmatpush1.bf16.msra.mxu0 %v3867_v63 }
 0x2c1   :  { %2770 = vmatprep.subr.bf16.mxu0 %v3872_v25 }
 0x2c4   :  { %2771 = vmatpush1.bf16.msra.mxu0 %v3870_v2 }
 0x2c5   :  { %2772 = vmatprep.subr.bf16.mxu0 %v3875_v44 }
 0x2c8   :  { %2773 = vmatpush1.bf16.msra.mxu0 %v3873_v4 }
 0x2c9   :  { %2774 = vmatprep.subr.bf16.mxu0 %v3878_v5 }
 0x2cc   :  { %2775 = vmatpush1.bf16.msra.mxu0 %v3876_v9 }
 0x2cd   :  { %2776 = vmatprep.subr.bf16.mxu0 %v3881_v10 }
 0x2d0   :  { %2777 = vmatpush1.bf16.msra.mxu0 %v3879_v11 }
 0x2d1   :  { %2778 = vmatprep.subr.bf16.mxu0 %v3884_v12 }
 0x2d4   :  { %2779 = vmatpush1.bf16.msra.mxu0 %v3882_v14 }
 0x2d5   :  { %2780 = vmatprep.subr.bf16.mxu0 %v3887_v15 }
 0x2d8   :  { %2781 = vmatpush1.bf16.msra.mxu0 %v3885_v16 }
 0x2d9   :  { %2782 = vmatprep.subr.bf16.mxu0 %v3890_v17 }
 0x2dc   :  { %2783 = vmatpush1.bf16.msra.mxu0 %v3888_v18 }
 0x2dd   :  { %2784 = vmatprep.subr.bf16.mxu0 %v3893_v19 }
 0x2e0   :  { %2785 = vmatpush1.bf16.msra.mxu0 %v3891_v20 }
 0x2e1   :  { %2786 = vmatprep.subr.bf16.mxu0 %v3896_v21 }
 0x2e4   :  { %2787 = vmatpush1.bf16.msra.mxu0 %v3894_v22 }
 0x2e5   :  { %2788 = vmatprep.subr.bf16.mxu0 %v3899_v23 }
 0x2e8   :  { %2789 = vmatpush1.bf16.msra.mxu0 %v3897_v24 }
 0x2e9   :  { %2790 = vmatprep.subr.bf16.mxu0 %v3902_v26 }
 0x2ec   :  { %2791 = vmatpush1.bf16.msra.mxu0 %v3900_v27 }
 0x2ed   :  { %2792 = vmatprep.subr.bf16.mxu0 %v3905_v30 }
 0x2f0   :  { %2793 = vmatpush1.bf16.msra.mxu0 %v3903_v31 }
 0x2f1   :  { %2794 = vmatprep.subr.bf16.mxu0 %v3908_v32 }
 0x2f4   :  { %2795 = vmatpush1.bf16.msra.mxu0 %v3906_v33 }
 0x2f5   :  { %2796 = vmatprep.subr.bf16.mxu0 %v3911_v34 }
 0x2f8   :  { %2797 = vmatpush1.bf16.msra.mxu0 %v3909_v35 }
 0x32a   :  { %v2314_v42 = vpop.f32.mrb[4].mxu1 }
 0x32b   :  { %v3388_v43 = vadd.f32 %v2314_v42, %v704_v36  ;;  %v2316_v45 = vpop.f32.mrb[5].mxu1 }
 0x32c   :  { %v3389_v29 = vadd.f32 %v2316_v45, %v708_v13  ;;  %v2318_v57 = vpop.f32.mrb[6].mxu1 }
 0x32d   :  { %v2323_v47 = vmax.f32 %v3388_v43, 0.0  ;;  %v2319_v7 = vpop.f32.mrb[7].mxu1 }
 0x32e   :  { %v2324_v50 = vmax.f32 %v3389_v29, 0.0 }
 0x32f   :  { %v2327_v59 = vpack.c.bf16 %v2323_v47, %v2323_v47 }
 0x330   :  { %v2328_v51 = vpack.c.bf16 %v2324_v50, %v2324_v50 }
 0x332   :  { %2798 = vmatprep.mubr.bf16.mxu0 %v2328_v51 }
 0x333   :  { %2799 = vmatmul.mubr.bf16.vlgmr.msra.gmra.mrb[20].mxu0 %v2327_v59 }
 0x406   :  { %v2800_v55 = vpop.f32.mrb[20].mxu0 }
 0x407   :  { %v3390_v39 = vadd.f32 %v2800_v55, %v2398_v41  ;;  %v2802_v56 = vpop.f32.mrb[21].mxu0 }
 0x408   :  { %v3391_v58 = vadd.f32 %v2802_v56, %v2402_v54  ;;  %v2804_v28 = vpop.f32.mrb[22].mxu0 }
 0x409   :  { %v2807_v60 = vmax.f32 %v3390_v39, 0.0  ;;  %v2805_v61 = vpop.f32.mrb[23].mxu0 }
 0x40a   :  { %v2808_v62 = vmax.f32 %v3391_v58, 0.0 }
 0x40b   :  { %v2809_v63 = vpack.c.bf16 %v2807_v60, %v2807_v60 }
 0x40c   :  { %v2810_v6 = vpack.c.bf16 %v2808_v62, %v2808_v62 }
 0x40e   :  { %2978 = vmatprep.mubr.bf16.mxu1 %v2810_v6 }
 0x40f   :  { %2979 = vmatmul.mubr.bf16.vlgmr.msra.gmra.mrb[8].mxu1 %v2809_v63 }
 0x4e2   :  { %v3378_v25 = vpop.f32.mrb[8].mxu1 }
 0x4e3   :  { %v3379_v38 = vpop.f32.mrb[9].mxu1 }
 0x4e4   :  { %v3380_v40 = vadd.f32 %v3379_v38, %v3378_v25  ;;  %v3381_v1 = vpop.f32.mrb[10].mxu1 }
 0x4e5   :  { %v3382_v2 = vpop.f32.mrb[11].mxu1 }
 0x4e6   :  { %v2981_v44 = vadd.f32 %v3380_v40, %v3345_v0 }
 0x4e8   :  { %2986 = vst [vmem:[#allocation13] sm:$0xff] %v2981_v44 }
 0x4e9   :  { %4071 = shalt.err (!%p4068_p10)
}
 0x4ea   :  { %s4072_s8 = scalar_lea.hbm %s4355_s9, 128 }
 0x4eb   :  { %p4073_p11 = scmp.ne.s32.totalorder %s4355_s9, %s4072_s8  ;;  %p4076_p12 = scmp.lt.u32.totalorder %s4072_s8, %s4355_s9 }
 0x4ed   :  { %p4078_p13 = pnand %p4076_p12, %p4073_p11 }
 0x4ef   :  { %4081 = shalt.err (!%p4078_p13)
}
 0x4f0   :  { %2996 = dma.vmem_to_hbm [thread:$0]  %s2994_s22, 128, %s4355_s9, [#allocation4]  }
 0x4f1   :  { %4090 = dma.done.wait [#allocation4], 128  }
 0x4f2   :  { %4091 = vsyncadd [#allocation4], 4294967168 }
 0x4f3   :  { %3000 = vsyncpa [#allocation3], 1 }
 0x4f4   :  { %3001 = vsyncpa [#allocation6], 1 }
 0x4f5   :  { %3002 = vsyncpa [#allocation9], 1 }
 0x4f6   :  { %3003 = vsyncpa [#allocation12], 1 }
 0x4f7   :  { %3004 = vsyncpa [#allocation4], 1 }

</bundles_post_ra>
